<compile_context>
chip_gen: v5e
topology: v5e:2x2
jax: 0.10.0
libtpu: 0.0.40
codegen_flags: <defaults>
</compile_context>

<pallas_src>
import functools

import jax
import jax.numpy as jnp
from jax import lax
from jax.experimental import pallas as pl
from jax.experimental.pallas import tpu as pltpu


def _round_up(x, m):
    return (x + m - 1) // m * m


def _dwconv_kernel(x_ref, w_ref, b_ref, o_ref, xpad_ref):
    """Depthwise 3x3, stride 1, pad 1, + bias on one (batch, channel-tile) block.

    x_ref    : (1, H, W, CT)      input tile, channels-last (C on lanes)
    w_ref    : (9, CT)            taps, row k = kh*3 + kw
    b_ref    : (1, CT)            bias
    o_ref    : (1, H, W, CT)      output tile
    xpad_ref : (H+2, Wp, CT)      zero-padded input scratch, Wp = round_up(W+2, 8),
                                  in the INPUT dtype (persistent across grid steps)
    """
    _, H, W, CT = x_ref.shape
    Wp = xpad_ref.shape[1]
    dt = x_ref.dtype

    # Refresh only the 1-pixel halo (never touched by the interior write), then copy the
    # interior without widening.  Columns >= W+2 of the scratch are never read.
    zrow = jnp.zeros((1, Wp, CT), dt)
    xpad_ref[0:1, :, :] = zrow                     # top halo (full aligned width)
    xpad_ref[H + 1:H + 2, :, :] = zrow             # bottom halo
    zcol = jnp.zeros((H, 1, CT), dt)
    xpad_ref[1:H + 1, 0:1, :] = zcol               # left halo
    xpad_ref[1:H + 1, W + 1:W + 2, :] = zcol       # right halo
    xpad_ref[1:H + 1, 1:W + 1, :] = x_ref[0]       # interior, input dtype

    # Hoisted per-channel taps / bias (loaded + reshaped once per grid step).
    w = w_ref[...].astype(jnp.float32).reshape(9, 1, 1, CT)
    bias = b_ref[...].astype(jnp.float32).reshape(1, 1, CT)

    # Strip-mine the 9 shifted MACs over H in sublane-multiple strips.
    HS = 8 if H % 8 == 0 else H
    n_strips = H // HS

    def strip(i, carry):
        h0 = pl.multiple_of(i * HS, HS)
        # Bias folded into the first MAC; f32 accumulation on the VPU.
        acc = xpad_ref[pl.ds(h0, HS), 0:W, :].astype(jnp.float32) * w[0] + bias
        for k in range(1, 9):
            kh, kw = divmod(k, 3)
            win = xpad_ref[pl.ds(h0 + kh, HS), kw:kw + W, :].astype(jnp.float32)
            acc = acc + win * w[k]
        o_ref[0, pl.ds(h0, HS), :, :] = acc.astype(o_ref.dtype)
        return carry

    lax.fori_loop(0, n_strips, strip, 0,
                  unroll=True if n_strips <= 16 else 8)


def _pick_channel_tile(Cp, H, W, itemsize, budget_bytes=2 * 1024 * 1024):
    """Largest multiple-of-128 divisor of Cp whose input block stays <= budget."""
    nk = Cp // 128
    best = 128
    for k in range(1, nk + 1):
        if nk % k != 0:
            continue
        ct = 128 * k
        if H * W * ct * itemsize <= budget_bytes:
            best = ct
    return best


@functools.partial(jax.jit, static_argnames=("H", "W"))
def dwconv_forward(x_seq, w9c, b1c, *, H, W):
    """x_seq: (B, N, C) with N == H*W.  w9c: (9, C).  b1c: (1, C).  Returns (B, N, C).

    I/O dtype is preserved (feed bf16 activations to halve HBM traffic; accumulation
    stays f32 inside the kernel)."""
    B, N, C = x_seq.shape
    assert N == H * W, (N, H, W)
    x_img = x_seq.reshape(B, H, W, C)   # contiguous: (b, h*W+w, c) == (b, h, w, c)

    # Lane-dense channels: zero-pad C up to a multiple of 128 (unmasked stores).
    Cp = _round_up(C, 128)
    if Cp != C:
        x_img = jnp.pad(x_img, ((0, 0), (0, 0), (0, 0), (0, Cp - C)))
        w9c = jnp.pad(w9c, ((0, 0), (0, Cp - C)))
        b1c = jnp.pad(b1c, ((0, 0), (0, Cp - C)))

    itemsize = jnp.dtype(x_seq.dtype).itemsize
    CT = _pick_channel_tile(Cp, H, W, itemsize)
    Wp = _round_up(W + 2, 8)
    HS = 8 if H % 8 == 0 else H

    # Explicit VMEM budget: 2*in + 2*out (double buffering) + scratch + f32 strip temps.
    in_block = H * W * CT * itemsize
    scratch_bytes = (H + 2) * Wp * CT * itemsize
    temp_bytes = 4 * HS * W * CT * 4
    need = 4 * in_block + scratch_bytes + temp_bytes + 12 * CT * 4
    vmem_limit = int(min(64 * 2**20, max(32 * 2**20, 2 * need)))

    grid = (Cp // CT, B)   # channel-outer: taps/bias stay resident across the batch loop

    out = pl.pallas_call(
        _dwconv_kernel,
        out_shape=jax.ShapeDtypeStruct((B, H, W, Cp), x_seq.dtype),
        grid=grid,
        in_specs=[
            pl.BlockSpec((1, H, W, CT), lambda c, b: (b, 0, 0, c)),
            pl.BlockSpec((9, CT), lambda c, b: (0, c)),
            pl.BlockSpec((1, CT), lambda c, b: (0, c)),
        ],
        out_specs=pl.BlockSpec((1, H, W, CT), lambda c, b: (b, 0, 0, c)),
        scratch_shapes=[pltpu.VMEM((H + 2, Wp, CT), x_seq.dtype)],
        compiler_params=pltpu.CompilerParams(
            dimension_semantics=("parallel", "parallel"),
            vmem_limit_bytes=vmem_limit),
    )(x_img, w9c, b1c)

    if Cp != C:
        out = out[..., :C]
    return out.reshape(B, N, C)


def prepare_params(weight, bias):
    """One-time weight re-layout (outside the jitted forward).

    weight: (C, 1, 3, 3) PyTorch depthwise layout, bias: (C,).
    Returns w9c: (9, C) with row k = kh*3 + kw, and b1c: (1, C)."""
    C = weight.shape[0]
    w9c = jnp.transpose(weight.reshape(C, 9), (1, 0))
    b1c = bias.reshape(1, C)
    return w9c, b1c


def dwconv_ref(x_seq, weight, bias, H, W):
    """Pure-JAX reference matching the PyTorch module (f32)."""
    B, N, C = x_seq.shape
    img = jnp.transpose(x_seq.reshape(B, H, W, C), (0, 3, 1, 2))     # NCHW
    out = jax.lax.conv_general_dilated(
        img, weight, window_strides=(1, 1), padding=((1, 1), (1, 1)),
        feature_group_count=C,
        dimension_numbers=("NCHW", "OIHW", "NCHW"),
        precision=jax.lax.Precision.HIGHEST)
    out = out + bias.reshape(1, C, 1, 1)
    return jnp.transpose(out, (0, 2, 3, 1)).reshape(B, N, C)


if __name__ == "__main__":
    key = jax.random.PRNGKey(0)
    kx, kw, kb = jax.random.split(key, 3)

    # Small shapes consistent with the module (dim on lanes, N = H*W).
    B, H, W, C = 2, 16, 16, 128
    N = H * W
    x = jax.random.normal(kx, (B, N, C), jnp.float32)
    weight = jax.random.normal(kw, (C, 1, 3, 3), jnp.float32) / 3.0   # groups=C depthwise
    bias = 0.1 * jax.random.normal(kb, (C,), jnp.float32)

    w9c, b1c = prepare_params(weight, bias)
    out = jax.block_until_ready(dwconv_forward(x, w9c, b1c, H=H, W=W))

    assert out.shape == (B, N, C), out.shape
    assert bool(jnp.isfinite(out).all())
    ref = dwconv_ref(x, weight, bias, H, W)
    assert bool(jnp.allclose(out, ref, atol=1e-4, rtol=1e-4)), \
        float(jnp.max(jnp.abs(out - ref)))

    # Ragged-channel path: C not a multiple of 128 gets lane-padded inside the wrapper.
    C2 = 96
    x2 = jax.random.normal(kx, (B, N, C2), jnp.float32)
    weight2 = jax.random.normal(kw, (C2, 1, 3, 3), jnp.float32) / 3.0
    bias2 = 0.1 * jax.random.normal(kb, (C2,), jnp.float32)
    w9c2, b1c2 = prepare_params(weight2, bias2)
    out2 = jax.block_until_ready(dwconv_forward(x2, w9c2, b1c2, H=H, W=W))
    ref2 = dwconv_ref(x2, weight2, bias2, H, W)
    assert out2.shape == (B, N, C2)
    assert bool(jnp.allclose(out2, ref2, atol=1e-4, rtol=1e-4)), \
        float(jnp.max(jnp.abs(out2 - ref2)))

    print("KERNEL_OK")
</pallas_src>

<mosaic_0001>
module attributes {stable_mosaic.version = 11 : i64} {
  func.func @_dwconv_kernel(%arg0: i32, %arg1: i32, %arg2: memref<1x16x16x128xf32, #tpu.memory_space<vmem>>, %arg3: memref<9x128xf32, #tpu.memory_space<vmem>>, %arg4: memref<1x128xf32, #tpu.memory_space<vmem>>, %arg5: memref<1x16x16x128xf32, #tpu.memory_space<vmem>>, %arg6: memref<18x24x128xf32, #tpu.memory_space<vmem>>) attributes {dimension_semantics = [#tpu.dimension_semantics<parallel>, #tpu.dimension_semantics<parallel>], iteration_bounds = array<i64: 1, 2>, scalar_prefetch = 0 : i64, scratch_operands = 1 : i64, tpu.core_type = #tpu.core_type<tc>, window_params = [{transform_indices = @transform_0, window_bounds = array<i64: 1, 16, 16, 128>}, {transform_indices = @transform_1, window_bounds = array<i64: 9, 128>}, {transform_indices = @transform_2, window_bounds = array<i64: 1, 128>}, {transform_indices = @transform_3, window_bounds = array<i64: 1, 16, 16, 128>}]} {
    %cst = arith.constant 0.000000e+00 : f32
    %0 = vector.broadcast %cst : f32 to vector<1x24x128xf32>
    %c0 = arith.constant 0 : index
    %c0_0 = arith.constant 0 : index
    %c0_1 = arith.constant 0 : index
    %1 = vector.load %arg6[%c0, %c0_0, %c0_1] : memref<18x24x128xf32, #tpu.memory_space<vmem>>, vector<1x24x128xf32>
    tpu.vector_store %arg6[%c0, %c0_0, %c0_1], %0 {strides = array<i32>} : memref<18x24x128xf32, #tpu.memory_space<vmem>>, vector<1x24x128xf32>,
    %c17 = arith.constant 17 : index
    %c0_2 = arith.constant 0 : index
    %c0_3 = arith.constant 0 : index
    %2 = vector.load %arg6[%c17, %c0_2, %c0_3] : memref<18x24x128xf32, #tpu.memory_space<vmem>>, vector<1x24x128xf32>
    tpu.vector_store %arg6[%c17, %c0_2, %c0_3], %0 {strides = array<i32>} : memref<18x24x128xf32, #tpu.memory_space<vmem>>, vector<1x24x128xf32>,
    %cst_4 = arith.constant 0.000000e+00 : f32
    %3 = vector.broadcast %cst_4 : f32 to vector<16x1x128xf32>
    %c1 = arith.constant 1 : index
    %c0_5 = arith.constant 0 : index
    %c0_6 = arith.constant 0 : index
    %4 = vector.load %arg6[%c1, %c0_5, %c0_6] : memref<18x24x128xf32, #tpu.memory_space<vmem>>, vector<16x1x128xf32>
    tpu.vector_store %arg6[%c1, %c0_5, %c0_6], %3 {strides = array<i32>} : memref<18x24x128xf32, #tpu.memory_space<vmem>>, vector<16x1x128xf32>,
    %c1_7 = arith.constant 1 : index
    %c17_8 = arith.constant 17 : index
    %c0_9 = arith.constant 0 : index
    %5 = vector.load %arg6[%c1_7, %c17_8, %c0_9] : memref<18x24x128xf32, #tpu.memory_space<vmem>>, vector<16x1x128xf32>
    tpu.vector_store %arg6[%c1_7, %c17_8, %c0_9], %3 {strides = array<i32>} : memref<18x24x128xf32, #tpu.memory_space<vmem>>, vector<16x1x128xf32>,
    %c0_10 = arith.constant 0 : index
    %c0_11 = arith.constant 0 : index
    %c0_12 = arith.constant 0 : index
    %c0_13 = arith.constant 0 : index
    %6 = vector.load %arg2[%c0_10, %c0_11, %c0_12, %c0_13] : memref<1x16x16x128xf32, #tpu.memory_space<vmem>>, vector<1x16x16x128xf32>
    %7 = vector.shape_cast %6 : vector<1x16x16x128xf32> to vector<16x16x128xf32>
    %c1_14 = arith.constant 1 : index
    %c1_15 = arith.constant 1 : index
    %c0_16 = arith.constant 0 : index
    %8 = vector.load %arg6[%c1_14, %c1_15, %c0_16] : memref<18x24x128xf32, #tpu.memory_space<vmem>>, vector<16x16x128xf32>
    tpu.vector_store %arg6[%c1_14, %c1_15, %c0_16], %7 {strides = array<i32>} : memref<18x24x128xf32, #tpu.memory_space<vmem>>, vector<16x16x128xf32>,
    %c0_17 = arith.constant 0 : index
    %c0_18 = arith.constant 0 : index
    %9 = vector.load %arg3[%c0_17, %c0_18] : memref<9x128xf32, #tpu.memory_space<vmem>>, vector<9x128xf32>
    %10 = vector.shape_cast %9 : vector<9x128xf32> to vector<9x1x1x128xf32>
    %c0_19 = arith.constant 0 : index
    %c0_20 = arith.constant 0 : index
    %11 = vector.load %arg4[%c0_19, %c0_20] : memref<1x128xf32, #tpu.memory_space<vmem>>, vector<1x128xf32>
    %12 = vector.shape_cast %11 : vector<1x128xf32> to vector<1x1x128xf32>
    %c0_i32 = arith.constant 0 : i32
    %c8_i32 = arith.constant 8 : i32
    %13 = arith.muli %c0_i32, %c8_i32 : i32
    %14 = tpu.assume_multiple %13, 8 : i32
    %15 = arith.index_cast %14 : i32 to index
    %c0_21 = arith.constant 0 : index
    %c0_22 = arith.constant 0 : index
    %16 = vector.load %arg6[%15, %c0_21, %c0_22] : memref<18x24x128xf32, #tpu.memory_space<vmem>>, vector<8x16x128xf32>
    %17 = vector.extract_strided_slice %10 {offsets = [0, 0, 0, 0], sizes = [1, 1, 1, 128], strides = [1, 1, 1, 1]} : vector<9x1x1x128xf32> to vector<1x1x1x128xf32>
    %18 = vector.shape_cast %17 : vector<1x1x1x128xf32> to vector<1x1x128xf32>
    %19 = vector.broadcast %18 : vector<1x1x128xf32> to vector<8x16x128xf32>
    %20 = arith.mulf %16, %19 : vector<8x16x128xf32>
    %21 = vector.broadcast %12 : vector<1x1x128xf32> to vector<8x16x128xf32>
    %22 = arith.addf %20, %21 : vector<8x16x128xf32>
    %c0_i32_23 = arith.constant 0 : i32
    %23 = arith.addi %14, %c0_i32_23 : i32
    %24 = arith.index_cast %23 : i32 to index
    %c1_24 = arith.constant 1 : index
    %c0_25 = arith.constant 0 : index
    %25 = vector.load %arg6[%24, %c1_24, %c0_25] : memref<18x24x128xf32, #tpu.memory_space<vmem>>, vector<8x16x128xf32>
    %26 = vector.extract_strided_slice %10 {offsets = [1, 0, 0, 0], sizes = [1, 1, 1, 128], strides = [1, 1, 1, 1]} : vector<9x1x1x128xf32> to vector<1x1x1x128xf32>
    %27 = vector.shape_cast %26 : vector<1x1x1x128xf32> to vector<1x1x128xf32>
    %28 = vector.broadcast %27 : vector<1x1x128xf32> to vector<8x16x128xf32>
    %29 = arith.mulf %25, %28 : vector<8x16x128xf32>
    %30 = arith.addf %22, %29 : vector<8x16x128xf32>
    %c0_i32_26 = arith.constant 0 : i32
    %31 = arith.addi %14, %c0_i32_26 : i32
    %32 = arith.index_cast %31 : i32 to index
    %c2 = arith.constant 2 : index
    %c0_27 = arith.constant 0 : index
    %33 = vector.load %arg6[%32, %c2, %c0_27] : memref<18x24x128xf32, #tpu.memory_space<vmem>>, vector<8x16x128xf32>
    %34 = vector.extract_strided_slice %10 {offsets = [2, 0, 0, 0], sizes = [1, 1, 1, 128], strides = [1, 1, 1, 1]} : vector<9x1x1x128xf32> to vector<1x1x1x128xf32>
    %35 = vector.shape_cast %34 : vector<1x1x1x128xf32> to vector<1x1x128xf32>
    %36 = vector.broadcast %35 : vector<1x1x128xf32> to vector<8x16x128xf32>
    %37 = arith.mulf %33, %36 : vector<8x16x128xf32>
    %38 = arith.addf %30, %37 : vector<8x16x128xf32>
    %c1_i32 = arith.constant 1 : i32
    %39 = arith.addi %14, %c1_i32 : i32
    %40 = arith.index_cast %39 : i32 to index
    %c0_28 = arith.constant 0 : index
    %c0_29 = arith.constant 0 : index
    %41 = vector.load %arg6[%40, %c0_28, %c0_29] : memref<18x24x128xf32, #tpu.memory_space<vmem>>, vector<8x16x128xf32>
    %42 = vector.extract_strided_slice %10 {offsets = [3, 0, 0, 0], sizes = [1, 1, 1, 128], strides = [1, 1, 1, 1]} : vector<9x1x1x128xf32> to vector<1x1x1x128xf32>
    %43 = vector.shape_cast %42 : vector<1x1x1x128xf32> to vector<1x1x128xf32>
    %44 = vector.broadcast %43 : vector<1x1x128xf32> to vector<8x16x128xf32>
    %45 = arith.mulf %41, %44 : vector<8x16x128xf32>
    %46 = arith.addf %38, %45 : vector<8x16x128xf32>
    %c1_i32_30 = arith.constant 1 : i32
    %47 = arith.addi %14, %c1_i32_30 : i32
    %48 = arith.index_cast %47 : i32 to index
    %c1_31 = arith.constant 1 : index
    %c0_32 = arith.constant 0 : index
    %49 = vector.load %arg6[%48, %c1_31, %c0_32] : memref<18x24x128xf32, #tpu.memory_space<vmem>>, vector<8x16x128xf32>
    %50 = vector.extract_strided_slice %10 {offsets = [4, 0, 0, 0], sizes = [1, 1, 1, 128], strides = [1, 1, 1, 1]} : vector<9x1x1x128xf32> to vector<1x1x1x128xf32>
    %51 = vector.shape_cast %50 : vector<1x1x1x128xf32> to vector<1x1x128xf32>
    %52 = vector.broadcast %51 : vector<1x1x128xf32> to vector<8x16x128xf32>
    %53 = arith.mulf %49, %52 : vector<8x16x128xf32>
    %54 = arith.addf %46, %53 : vector<8x16x128xf32>
    %c1_i32_33 = arith.constant 1 : i32
    %55 = arith.addi %14, %c1_i32_33 : i32
    %56 = arith.index_cast %55 : i32 to index
    %c2_34 = arith.constant 2 : index
    %c0_35 = arith.constant 0 : index
    %57 = vector.load %arg6[%56, %c2_34, %c0_35] : memref<18x24x128xf32, #tpu.memory_space<vmem>>, vector<8x16x128xf32>
    %58 = vector.extract_strided_slice %10 {offsets = [5, 0, 0, 0], sizes = [1, 1, 1, 128], strides = [1, 1, 1, 1]} : vector<9x1x1x128xf32> to vector<1x1x1x128xf32>
    %59 = vector.shape_cast %58 : vector<1x1x1x128xf32> to vector<1x1x128xf32>
    %60 = vector.broadcast %59 : vector<1x1x128xf32> to vector<8x16x128xf32>
    %61 = arith.mulf %57, %60 : vector<8x16x128xf32>
    %62 = arith.addf %54, %61 : vector<8x16x128xf32>
    %c2_i32 = arith.constant 2 : i32
    %63 = arith.addi %14, %c2_i32 : i32
    %64 = arith.index_cast %63 : i32 to index
    %c0_36 = arith.constant 0 : index
    %c0_37 = arith.constant 0 : index
    %65 = vector.load %arg6[%64, %c0_36, %c0_37] : memref<18x24x128xf32, #tpu.memory_space<vmem>>, vector<8x16x128xf32>
    %66 = vector.extract_strided_slice %10 {offsets = [6, 0, 0, 0], sizes = [1, 1, 1, 128], strides = [1, 1, 1, 1]} : vector<9x1x1x128xf32> to vector<1x1x1x128xf32>
    %67 = vector.shape_cast %66 : vector<1x1x1x128xf32> to vector<1x1x128xf32>
    %68 = vector.broadcast %67 : vector<1x1x128xf32> to vector<8x16x128xf32>
    %69 = arith.mulf %65, %68 : vector<8x16x128xf32>
    %70 = arith.addf %62, %69 : vector<8x16x128xf32>
    %c2_i32_38 = arith.constant 2 : i32
    %71 = arith.addi %14, %c2_i32_38 : i32
    %72 = arith.index_cast %71 : i32 to index
    %c1_39 = arith.constant 1 : index
    %c0_40 = arith.constant 0 : index
    %73 = vector.load %arg6[%72, %c1_39, %c0_40] : memref<18x24x128xf32, #tpu.memory_space<vmem>>, vector<8x16x128xf32>
    %74 = vector.extract_strided_slice %10 {offsets = [7, 0, 0, 0], sizes = [1, 1, 1, 128], strides = [1, 1, 1, 1]} : vector<9x1x1x128xf32> to vector<1x1x1x128xf32>
    %75 = vector.shape_cast %74 : vector<1x1x1x128xf32> to vector<1x1x128xf32>
    %76 = vector.broadcast %75 : vector<1x1x128xf32> to vector<8x16x128xf32>
    %77 = arith.mulf %73, %76 : vector<8x16x128xf32>
    %78 = arith.addf %70, %77 : vector<8x16x128xf32>
    %c2_i32_41 = arith.constant 2 : i32
    %79 = arith.addi %14, %c2_i32_41 : i32
    %80 = arith.index_cast %79 : i32 to index
    %c2_42 = arith.constant 2 : index
    %c0_43 = arith.constant 0 : index
    %81 = vector.load %arg6[%80, %c2_42, %c0_43] : memref<18x24x128xf32, #tpu.memory_space<vmem>>, vector<8x16x128xf32>
    %82 = vector.extract_strided_slice %10 {offsets = [8, 0, 0, 0], sizes = [1, 1, 1, 128], strides = [1, 1, 1, 1]} : vector<9x1x1x128xf32> to vector<1x1x1x128xf32>
    %83 = vector.shape_cast %82 : vector<1x1x1x128xf32> to vector<1x1x128xf32>
    %84 = vector.broadcast %83 : vector<1x1x128xf32> to vector<8x16x128xf32>
    %85 = arith.mulf %81, %84 : vector<8x16x128xf32>
    %86 = arith.addf %78, %85 : vector<8x16x128xf32>
    %c0_44 = arith.constant 0 : index
    %87 = arith.index_cast %14 : i32 to index
    %c0_45 = arith.constant 0 : index
    %c0_46 = arith.constant 0 : index
    %88 = vector.load %arg5[%c0_44, %87, %c0_45, %c0_46] : memref<1x16x16x128xf32, #tpu.memory_space<vmem>>, vector<1x8x16x128xf32>
    %89 = vector.shape_cast %88 : vector<1x8x16x128xf32> to vector<8x16x128xf32>
    %90 = vector.shape_cast %86 : vector<8x16x128xf32> to vector<1x8x16x128xf32>
    tpu.vector_store %arg5[%c0_44, %87, %c0_45, %c0_46], %90 {strides = array<i32>} : memref<1x16x16x128xf32, #tpu.memory_space<vmem>>, vector<1x8x16x128xf32>,
    %c1_i32_47 = arith.constant 1 : i32
    %c8_i32_48 = arith.constant 8 : i32
    %91 = arith.muli %c1_i32_47, %c8_i32_48 : i32
    %92 = tpu.assume_multiple %91, 8 : i32
    %93 = arith.index_cast %92 : i32 to index
    %c0_49 = arith.constant 0 : index
    %c0_50 = arith.constant 0 : index
    %94 = vector.load %arg6[%93, %c0_49, %c0_50] : memref<18x24x128xf32, #tpu.memory_space<vmem>>, vector<8x16x128xf32>
    %95 = vector.extract_strided_slice %10 {offsets = [0, 0, 0, 0], sizes = [1, 1, 1, 128], strides = [1, 1, 1, 1]} : vector<9x1x1x128xf32> to vector<1x1x1x128xf32>
    %96 = vector.shape_cast %95 : vector<1x1x1x128xf32> to vector<1x1x128xf32>
    %97 = vector.broadcast %96 : vector<1x1x128xf32> to vector<8x16x128xf32>
    %98 = arith.mulf %94, %97 : vector<8x16x128xf32>
    %99 = vector.broadcast %12 : vector<1x1x128xf32> to vector<8x16x128xf32>
    %100 = arith.addf %98, %99 : vector<8x16x128xf32>
    %c0_i32_51 = arith.constant 0 : i32
    %101 = arith.addi %92, %c0_i32_51 : i32
    %102 = arith.index_cast %101 : i32 to index
    %c1_52 = arith.constant 1 : index
    %c0_53 = arith.constant 0 : index
    %103 = vector.load %arg6[%102, %c1_52, %c0_53] : memref<18x24x128xf32, #tpu.memory_space<vmem>>, vector<8x16x128xf32>
    %104 = vector.extract_strided_slice %10 {offsets = [1, 0, 0, 0], sizes = [1, 1, 1, 128], strides = [1, 1, 1, 1]} : vector<9x1x1x128xf32> to vector<1x1x1x128xf32>
    %105 = vector.shape_cast %104 : vector<1x1x1x128xf32> to vector<1x1x128xf32>
    %106 = vector.broadcast %105 : vector<1x1x128xf32> to vector<8x16x128xf32>
    %107 = arith.mulf %103, %106 : vector<8x16x128xf32>
    %108 = arith.addf %100, %107 : vector<8x16x128xf32>
    %c0_i32_54 = arith.constant 0 : i32
    %109 = arith.addi %92, %c0_i32_54 : i32
    %110 = arith.index_cast %109 : i32 to index
    %c2_55 = arith.constant 2 : index
    %c0_56 = arith.constant 0 : index
    %111 = vector.load %arg6[%110, %c2_55, %c0_56] : memref<18x24x128xf32, #tpu.memory_space<vmem>>, vector<8x16x128xf32>
    %112 = vector.extract_strided_slice %10 {offsets = [2, 0, 0, 0], sizes = [1, 1, 1, 128], strides = [1, 1, 1, 1]} : vector<9x1x1x128xf32> to vector<1x1x1x128xf32>
    %113 = vector.shape_cast %112 : vector<1x1x1x128xf32> to vector<1x1x128xf32>
    %114 = vector.broadcast %113 : vector<1x1x128xf32> to vector<8x16x128xf32>
    %115 = arith.mulf %111, %114 : vector<8x16x128xf32>
    %116 = arith.addf %108, %115 : vector<8x16x128xf32>
    %c1_i32_57 = arith.constant 1 : i32
    %117 = arith.addi %92, %c1_i32_57 : i32
    %118 = arith.index_cast %117 : i32 to index
    %c0_58 = arith.constant 0 : index
    %c0_59 = arith.constant 0 : index
    %119 = vector.load %arg6[%118, %c0_58, %c0_59] : memref<18x24x128xf32, #tpu.memory_space<vmem>>, vector<8x16x128xf32>
    %120 = vector.extract_strided_slice %10 {offsets = [3, 0, 0, 0], sizes = [1, 1, 1, 128], strides = [1, 1, 1, 1]} : vector<9x1x1x128xf32> to vector<1x1x1x128xf32>
    %121 = vector.shape_cast %120 : vector<1x1x1x128xf32> to vector<1x1x128xf32>
    %122 = vector.broadcast %121 : vector<1x1x128xf32> to vector<8x16x128xf32>
    %123 = arith.mulf %119, %122 : vector<8x16x128xf32>
    %124 = arith.addf %116, %123 : vector<8x16x128xf32>
    %c1_i32_60 = arith.constant 1 : i32
    %125 = arith.addi %92, %c1_i32_60 : i32
    %126 = arith.index_cast %125 : i32 to index
    %c1_61 = arith.constant 1 : index
    %c0_62 = arith.constant 0 : index
    %127 = vector.load %arg6[%126, %c1_61, %c0_62] : memref<18x24x128xf32, #tpu.memory_space<vmem>>, vector<8x16x128xf32>
    %128 = vector.extract_strided_slice %10 {offsets = [4, 0, 0, 0], sizes = [1, 1, 1, 128], strides = [1, 1, 1, 1]} : vector<9x1x1x128xf32> to vector<1x1x1x128xf32>
    %129 = vector.shape_cast %128 : vector<1x1x1x128xf32> to vector<1x1x128xf32>
    %130 = vector.broadcast %129 : vector<1x1x128xf32> to vector<8x16x128xf32>
    %131 = arith.mulf %127, %130 : vector<8x16x128xf32>
    %132 = arith.addf %124, %131 : vector<8x16x128xf32>
    %c1_i32_63 = arith.constant 1 : i32
    %133 = arith.addi %92, %c1_i32_63 : i32
    %134 = arith.index_cast %133 : i32 to index
    %c2_64 = arith.constant 2 : index
    %c0_65 = arith.constant 0 : index
    %135 = vector.load %arg6[%134, %c2_64, %c0_65] : memref<18x24x128xf32, #tpu.memory_space<vmem>>, vector<8x16x128xf32>
    %136 = vector.extract_strided_slice %10 {offsets = [5, 0, 0, 0], sizes = [1, 1, 1, 128], strides = [1, 1, 1, 1]} : vector<9x1x1x128xf32> to vector<1x1x1x128xf32>
    %137 = vector.shape_cast %136 : vector<1x1x1x128xf32> to vector<1x1x128xf32>
    %138 = vector.broadcast %137 : vector<1x1x128xf32> to vector<8x16x128xf32>
    %139 = arith.mulf %135, %138 : vector<8x16x128xf32>
    %140 = arith.addf %132, %139 : vector<8x16x128xf32>
    %c2_i32_66 = arith.constant 2 : i32
    %141 = arith.addi %92, %c2_i32_66 : i32
    %142 = arith.index_cast %141 : i32 to index
    %c0_67 = arith.constant 0 : index
    %c0_68 = arith.constant 0 : index
    %143 = vector.load %arg6[%142, %c0_67, %c0_68] : memref<18x24x128xf32, #tpu.memory_space<vmem>>, vector<8x16x128xf32>
    %144 = vector.extract_strided_slice %10 {offsets = [6, 0, 0, 0], sizes = [1, 1, 1, 128], strides = [1, 1, 1, 1]} : vector<9x1x1x128xf32> to vector<1x1x1x128xf32>
    %145 = vector.shape_cast %144 : vector<1x1x1x128xf32> to vector<1x1x128xf32>
    %146 = vector.broadcast %145 : vector<1x1x128xf32> to vector<8x16x128xf32>
    %147 = arith.mulf %143, %146 : vector<8x16x128xf32>
    %148 = arith.addf %140, %147 : vector<8x16x128xf32>
    %c2_i32_69 = arith.constant 2 : i32
    %149 = arith.addi %92, %c2_i32_69 : i32
    %150 = arith.index_cast %149 : i32 to index
    %c1_70 = arith.constant 1 : index
    %c0_71 = arith.constant 0 : index
    %151 = vector.load %arg6[%150, %c1_70, %c0_71] : memref<18x24x128xf32, #tpu.memory_space<vmem>>, vector<8x16x128xf32>
    %152 = vector.extract_strided_slice %10 {offsets = [7, 0, 0, 0], sizes = [1, 1, 1, 128], strides = [1, 1, 1, 1]} : vector<9x1x1x128xf32> to vector<1x1x1x128xf32>
    %153 = vector.shape_cast %152 : vector<1x1x1x128xf32> to vector<1x1x128xf32>
    %154 = vector.broadcast %153 : vector<1x1x128xf32> to vector<8x16x128xf32>
    %155 = arith.mulf %151, %154 : vector<8x16x128xf32>
    %156 = arith.addf %148, %155 : vector<8x16x128xf32>
    %c2_i32_72 = arith.constant 2 : i32
    %157 = arith.addi %92, %c2_i32_72 : i32
    %158 = arith.index_cast %157 : i32 to index
    %c2_73 = arith.constant 2 : index
    %c0_74 = arith.constant 0 : index
    %159 = vector.load %arg6[%158, %c2_73, %c0_74] : memref<18x24x128xf32, #tpu.memory_space<vmem>>, vector<8x16x128xf32>
    %160 = vector.extract_strided_slice %10 {offsets = [8, 0, 0, 0], sizes = [1, 1, 1, 128], strides = [1, 1, 1, 1]} : vector<9x1x1x128xf32> to vector<1x1x1x128xf32>
    %161 = vector.shape_cast %160 : vector<1x1x1x128xf32> to vector<1x1x128xf32>
    %162 = vector.broadcast %161 : vector<1x1x128xf32> to vector<8x16x128xf32>
    %163 = arith.mulf %159, %162 : vector<8x16x128xf32>
    %164 = arith.addf %156, %163 : vector<8x16x128xf32>
    %c0_75 = arith.constant 0 : index
    %165 = arith.index_cast %92 : i32 to index
    %c0_76 = arith.constant 0 : index
    %c0_77 = arith.constant 0 : index
    %166 = vector.load %arg5[%c0_75, %165, %c0_76, %c0_77] : memref<1x16x16x128xf32, #tpu.memory_space<vmem>>, vector<1x8x16x128xf32>
    %167 = vector.shape_cast %166 : vector<1x8x16x128xf32> to vector<8x16x128xf32>
    %168 = vector.shape_cast %164 : vector<8x16x128xf32> to vector<1x8x16x128xf32>
    tpu.vector_store %arg5[%c0_75, %165, %c0_76, %c0_77], %168 {strides = array<i32>} : memref<1x16x16x128xf32, #tpu.memory_space<vmem>>, vector<1x8x16x128xf32>,
    %c2_i32_78 = arith.constant 2 : i32
    return
  }
  func.func @transform_0(%arg0: i32, %arg1: i32) -> (i32, i32, i32, i32) {
    %c0_i32 = arith.constant 0 : i32
    %c0_i32_0 = arith.constant 0 : i32
    %c0_i32_1 = arith.constant 0 : i32
    return %arg1, %c0_i32, %c0_i32_0, %arg0 : i32, i32, i32, i32
  }
  func.func @transform_1(%arg0: i32, %arg1: i32) -> (i32, i32) {
    %c0_i32 = arith.constant 0 : i32
    %c0_i32_0 = arith.constant 0 : i32
    return %c0_i32, %arg0 : i32, i32
  }
  func.func @transform_2(%arg0: i32, %arg1: i32) -> (i32, i32) {
    %c0_i32 = arith.constant 0 : i32
    %c0_i32_0 = arith.constant 0 : i32
    return %c0_i32, %arg0 : i32, i32
  }
  func.func @transform_3(%arg0: i32, %arg1: i32) -> (i32, i32, i32, i32) {
    %c0_i32 = arith.constant 0 : i32
    %c0_i32_0 = arith.constant 0 : i32
    %c0_i32_1 = arith.constant 0 : i32
    return %arg1, %c0_i32, %c0_i32_0, %arg0 : i32, i32, i32, i32
  }
}

</mosaic_0001>

<bundles_post_ra>
// kernel: dwconv_forward.1
= control target key start
LH: loop header
LB: loop body
LE: loop exit
PB: predicated region body
PF: predicated region fallthrough
CT: control target
= control target key end

     0   :  { %s2526_s0 = inlined_call_operand.hbm [shape: f32[2,16,16,128], index: 0, kind: input, shape index: {}]   ;;  %s2527_s1 = inlined_call_operand.hbm [shape: f32[9,128], index: 1, kind: input, shape index: {}]   ;;  %s2528_s2 = inlined_call_operand.vmem [shape: f32[1,128], index: 2, kind: input, shape index: {}]   ;;  %s2529_s3 = inlined_call_operand.hbm [shape: f32[2,16,16,128], index: 3, kind: output, shape index: {}]  }
   0x1   :  { %2543 = sst [smem:[#allocation19_spill]] %s2527_s1 }
   0x2   :  { %8 = vsyncpa [#allocation4], 0 }
   0x3   :  { %10 = vsyncpa [#allocation4 + $0x1], 0 }
   0x4   :  { %11 = vsyncpa [#allocation7], 0 }
   0x5   :  { %12 = vsyncpa [#allocation5], 0 }
   0x6   :  { %14 = vsyncpa [#allocation5 + $0x1], 0  ;;  %s1706_s12 = smov 0   ;;  %s1708_s13 = smov 0  }
   0x7   :  { %s1710_s14 = smov 0   ;;  %s1712_s15 = smov 0  }
   0x8   :  { %s1714_s16 = smov 0   ;;  %s1716_s17 = smov 0  }
   0x9 LB: > { %s1413_s18 = sadd.s32 4294967295, %s1678_s17   ;;  %s1414_s19 = sadd.s32 4294967294, %s1678_s17   ;;  %s1678_s17 = sphi %s1716_s17, %s20_s17   ;;  %s1674_s16 = sphi %s1714_s16, %s2571_s16   ;;  %s1670_s15 = sphi %s1712_s15, %s2570_s15   ;;  %s1666_s14 = sphi %s1710_s14, %s2569_s14   ;;  %s1662_s13 = sphi %s1708_s13, %s2568_s13   ;;  %s1658_s12 = sphi %s1706_s12, %s2567_s12  }
   0xa   : > { %p54_p0 = scmp.ne.s32.totalorder %s1662_s13, %s1658_s12  ;;  %p1740_p1 = scmp.eq.s32.totalorder %s1413_s18, 0 }
   0xb   : > { %p1744_p2 = scmp.eq.s32.totalorder %s1413_s18, 1  ;;  %p138_p3 = scmp.eq.s32.totalorder %s1414_s19, 1 }
   0xc   : > { %p1750_p4 = por %p1740_p1, %p54_p0  ;;  %p1415_p5 = scmp.ge.s32.totalorder %s1678_s17, 1 }
   0xd   : > { %p1755_p6 = por %p138_p3, %p54_p0  ;;  %p145_p7 = scmp.lt.s32.totalorder %s1678_s17, 3 }
   0xe   : > { %s2548_s1 = sld [smem:[#allocation19_spill]]  ;;  %s1680_s28 = smov [#allocation6]  }
   0xf   : > { %p1763_p8 = pnand %p1415_p5, %p145_p7  ;;  %s160_s29 = sshll.u32 %s1680_s28, 4  ;;  %s161_s29 = int_to_ptr.vmem [resolvable:$true] %s160_s29 }
  0x10   : > { %p1418_p11 = scmp.ge.s32.totalorder %s1678_s17, 2  ;;  %s2530_s30 = smov 128  }
  0x11   : > { %p1457_p9 = pneg %p1763_p8  ;;  %s1682_s4 = smov 8  }
  0x12   : > { %s29_s5 = sadd.s32 1, %s1674_s16  ;;  %s41_s6 = sadd.s32 1, %s1666_s14 }
  0x13   : > { %p1458_p10 = pnand %p1457_p9, %p1740_p1  ;;  %p30_p12 = scmp.ge.s32.totalorder %s29_s5, 2 }
  0x14   : > { %s158_s26 = sshll.u32 %s2548_s1, 4  ;;  %p48_p13 = scmp.ne.s32.totalorder %s1666_s14, %s1662_s13  ;;  %s159_s26 = int_to_ptr.hbm [resolvable:$true] %s158_s26 }
  0x15   : > { %1460 = dma.hbm_to_vmem [thread:$0]  (!%p1458_p10), %s159_s26, 256, %s161_s29, [#allocation7], %s2530_s30, %s2530_s30, %s1682_s4  }
  0x16   : > { %p49_p0 = scmp.eq.s32.totalorder %s1678_s17, 0  ;;  %s2573_s5 = smov (%p30_p12, %s29_s5), 0 }
  0x17   : > { %p1788_p5 = por %p1744_p2, %p48_p13  ;;  %s36_s9 = ssub.s32 %s1674_s16, %s2573_s5 }
  0x18   : > { %p1782_p3 = por %p49_p0, %p48_p13  ;;  %p1470_p7 = scmp.lt.s32.totalorder %s1678_s17, 2 }
  0x19   : > { %p39_p9 = scmp.eq.s32.totalorder %s36_s9, 0  ;;  %s180_s10 = sand.u32 1, %s1666_s14  }
  0x1a   : > { %s1419_s11 = sshll.u32 %s180_s10, 8  ;;  %s1447_s19 = sshll.u32 %s1674_s16, 8 }
  0x1b   : > { %s1797_s18 = scalar_select %p39_p9, %s1666_s14, %s41_s6  }
  0x1c   : > { %s190_s26 = scalar_lea.hbm %s2526_s0, %s1447_s19  ;;  %s184_s28 = scalar_lea.vmem [#allocation3], %s1419_s11 }
  0x1d   : > { %s193_s29 = sshll.u32 %s184_s28, 4  ;;  %s191_s21 = sshll.u32 %s190_s26, 4  ;;  %s194_s29 = int_to_ptr.vmem [resolvable:$true] %s193_s29  ;;  %s192_s21 = int_to_ptr.hbm [resolvable:$true] %s191_s21 }
  0x1e   : > { %p1462_p2 = pnand %p1470_p7, %p1782_p3  ;;  %s181_s30 = scalar_lea.sflag [#allocation4], %s180_s10 }
  0x1f   : > { %s2552_s1 = smov 128   ;;  %205 = sbr.rel (%p1763_p8) target bundleno = 245 (0xf5), region = 32 }
  0x20   : > { %1464 = dma.hbm_to_vmem [thread:$0]  (!%p1462_p2), %s192_s21, 4096, %s194_s29, %s181_s30, %s2552_s1, %s2552_s1, %s1682_s4  }
  0x24   : > { %s1811_s6 = sand.u32 1, %s1662_s13  }
  0x25   : > { %s1423_s9 = sshll.u32 %s1811_s6, 8  ;;  %s208_s11 = scalar_lea.sflag [#allocation4], %s1811_s6 }
  0x26   : > { %s1817_s7 = scalar_lea.vmem [#allocation3], %s1423_s9 }
  0x27   : > { %1645 = dma.done.wait (%p1750_p4), %s208_s11, 4096  }
  0x28   : > { %1647 = vsyncadd (%p1750_p4), %s208_s11, 4294963200 }
  0x29   : > { %1649 = dma.done.wait (%p1740_p1), [#allocation7], 256  }
  0x2a   : > { %1651 = vsyncadd (%p1740_p1), [#allocation7], 4294967040  ;;  %v1683_v0 = vmov 0.0   ;;  %v350_v1 = vld [vmem:[#allocation6] sm:$0xff]  ;;  %v287_v4 = vld [vmem:[%s1817_s7 + $0x8] sm:$0xff]  ;;  %s2090_s22 = scalar_lea.vmem [#allocation8], %s1423_s9 }
  0x2b   : > { %246 = vst [vmem:[#allocation2] sm:$0xff] %v1683_v0  ;;  %v286_v2 = vld [vmem:[%s1817_s7] sm:$0xff]  ;;  %v1828_v3 = vperm.slane %v350_v1, 0  ;;  %v288_v5 = vld [vmem:[%s1817_s7 + $0x10] sm:$0xff]  ;;  %v1838_v9 = vperm.slane %v350_v1, 1  ;;  %v289_v10 = vld [vmem:[%s1817_s7 + $0x18] sm:$0xff] }
  0x2c   : > { %247 = vst [vmem:[#allocation2 + $0x8] sm:$0xff] %v1683_v0  ;;  %v1836_v7 = vld [vmem:[%s2528_s2] ss:$0 sm:$0xff]  ;;  %v1841_v12 = vperm.slane %v350_v1, 2  ;;  %v1844_v13 = vld [vmem:[%s1817_s7 + $0x20] sm:$0xff]  ;;  %v1849_v17 = vld [vmem:[%s1817_s7 + $0x28] sm:$0xff] }
  0x2d   : > { %248 = vst [vmem:[#allocation2 + $0x10] sm:$0xff] %v1683_v0  ;;  %v372_v6 = vmul.f32 0.0, %v1828_v3  ;;  %v1854_v21 = vld [vmem:[%s1817_s7 + $0x30] sm:$0xff]  ;;  %v1856_v23 = vperm.slane %v350_v1, 4  ;;  %v1858_v24 = vperm.slane %v350_v1, 7  ;;  %v1863_v26 = vld [vmem:[%s1817_s7 + $0x38] sm:$0xff]  ;;  %v426_v38 = vmul.f32 %v1838_v9, %v286_v2 }
  0x2e   : > { %250 = vst [vmem:[#allocation2 + $0x198] sm:$0xff] %v1683_v0  ;;  %v1865_v27 = vperm.slane %v350_v1, 3  ;;  %v1867_v28 = vperm.slane %v350_v1, 5  ;;  %v1871_v30 = vld [vmem:[%s1817_s7 + $0x40] sm:$0xff]  ;;  %v1874_v32 = vperm.slane %v350_v1, 6  ;;  %v1882_v35 = vld [vmem:[%s1817_s7 + $0x48] sm:$0xff]  ;;  %v1900_v44 = vmul.f32 %v1838_v9, %v287_v4 }
  0x2f   : > { %251 = vst [vmem:[#allocation2 + $0x1a0] sm:$0xff] %v1683_v0  ;;  %v391_v14 = vadd.f32 %v1836_v7, %v372_v6  ;;  %v574_v31 = vmul.f32 %v1856_v23, %v286_v2  ;;  %v1877_v33 = vmul.f32 %v1858_v24, %v288_v5  ;;  %v575_v34 = vmul.f32 %v1856_v23, %v287_v4  ;;  %v1893_v40 = vld [vmem:[%s1817_s7 + $0x50] sm:$0xff]  ;;  %v1907_v46 = vld [vmem:[%s1817_s7 + $0x58] sm:$0xff]  ;;  %v1920_v53 = vld [vmem:[%s1817_s7 + $0x60] sm:$0xff]  ;;  %s1448_s4 = sshll.u32 %s1670_s15, 8  ;;  %s1295_s15 = sshll.u32 %s2090_s22, 4  ;;  %s1296_s15 = int_to_ptr.vmem [resolvable:$true] %s1295_s15 }
  0x30   : > { %252 = vst [vmem:[#allocation2 + $0x1a8] sm:$0xff] %v1683_v0  ;;  %v1885_v37 = vmul.f32 %v1858_v24, %v289_v10  ;;  %v1889_v39 = vmul.f32 %v1856_v23, %v288_v5  ;;  %v1897_v43 = vmul.f32 %v1858_v24, %v1844_v13  ;;  %v1903_v45 = vmul.f32 %v1856_v23, %v289_v10  ;;  %v1936_v59 = vld [vmem:[%s1817_s7 + $0x68] sm:$0xff]  ;;  %s1294_s24 = scalar_lea.hbm %s2529_s3, %s1448_s4  ;;  %s1282_s26 = scalar_lea.sflag [#allocation5], %s1811_s6 }
  0x31   : > { %254 = vst [vmem:[#allocation2 + $0x18] sm:$0x1] %v1683_v0  ;;  %v1913_v51 = vmul.f32 %v1858_v24, %v1849_v17  ;;  %v1916_v52 = vmul.f32 %v1838_v9, %v288_v5  ;;  %v1925_v56 = vmul.f32 %v1856_v23, %v1844_v13  ;;  %v1929_v57 = vmul.f32 %v1858_v24, %v1854_v21  ;;  %v1938_v62 = vld [vmem:[#allocation6 + $0x8] ss:$0 sm:$0xff]  ;;  %s1297_s25 = sshll.u32 %s1294_s24, 4  ;;  %s1612_s11 = scalar_lea.hbm %s2529_s3, 512  ;;  %s1298_s25 = int_to_ptr.hbm [resolvable:$true] %s1297_s25 }
  0x32   : > { %255 = vst [vmem:[#allocation2 + $0x30] sm:$0x1] %v1683_v0  ;;  %v1932_v58 = vmul.f32 %v1838_v9, %v289_v10  ;;  %v1947_v1 = vmul.f32 %v1858_v24, %v1863_v26  ;;  %s1606_s28 = sshra.s32 %s1298_s25, 4  ;;  %s1607_s28 = int_to_ptr.hbm [resolvable:$true] %s1606_s28 }
  0x33   : > { %256 = vst [vmem:[#allocation2 + $0x48] sm:$0x1] %v1683_v0  ;;  %v407_v8 = vld [vmem:[#allocation2 + $0x1] sm:$0xff]  ;;  %s1608_s29 = scalar_lea.hbm %s1607_s28, 256  ;;  %p1613_p10 = scmp.lt.s32.totalorder %s1607_s28, %s2529_s3 }
  0x34   : > { %257 = vst [vmem:[#allocation2 + $0x60] sm:$0x1] %v1683_v0  ;;  %v456_v11 = vld [vmem:[#allocation2 + $0x2] sm:$0xff]  ;;  %v424_v15 = vmul.f32 %v1838_v9, %v407_v8  ;;  %v457_v20 = vld [vmem:[#allocation2 + $0xa] sm:$0xff]  ;;  %p1609_p1 = scmp.ne.s32.totalorder %s1607_s28, %s1608_s29  ;;  %p1614_p12 = scmp.lt.s32.totalorder %s1612_s11, %s1608_s29 }
  0x35   : > { %258 = vst [vmem:[#allocation2 + $0x78] sm:$0x1] %v1683_v0  ;;  %v408_v16 = vld [vmem:[#allocation2 + $0x9] sm:$0xff]  ;;  %v473_v18 = vmul.f32 %v1841_v12, %v456_v11  ;;  %v474_v25 = vmul.f32 %v1841_v12, %v457_v20  ;;  %v1960_v11 = vmul.f32 %v1856_v23, %v1854_v21 }
  0x36   : > { %259 = vst [vmem:[#allocation2 + $0x90] sm:$0x1] %v1683_v0  ;;  %v425_v19 = vmul.f32 %v1838_v9, %v408_v16  ;;  %v440_v22 = vadd.f32 %v424_v15, %v391_v14  ;;  %p1610_p4 = pnand %p1609_p1, %p1788_p5  ;;  %p1615_p13 = por %p1614_p12, %p1613_p10 }
  0x37   : > { %260 = vst [vmem:[#allocation2 + $0xa8] sm:$0x1] %v1683_v0 }
  0x38   : > { %261 = vst [vmem:[#allocation2 + $0xc0] sm:$0x1] %v1683_v0  ;;  %v441_v29 = vadd.f32 %v425_v19, %v391_v14  ;;  %v489_v36 = vadd.f32 %v473_v18, %v440_v22  ;;  %v1964_v14 = vld [vmem:[%s1817_s7 + $0x78] sm:$0xff]  ;;  %p1611_p8 = pneg %p1610_p4 }
  0x39   : > { %262 = vst [vmem:[#allocation2 + $0xd8] sm:$0x1] %v1683_v0 }
  0x3a   : > { %263 = vst [vmem:[#allocation2 + $0xf0] sm:$0x1] %v1683_v0  ;;  %v490_v42 = vadd.f32 %v474_v25, %v441_v29  ;;  %p1616_p0 = pnand %p1615_p13, %p1611_p8 }
  0x3b   : > { %264 = vst [vmem:[#allocation2 + $0x108] sm:$0x1] %v1683_v0 }
  0x3c   : > { %265 = vst [vmem:[#allocation2 + $0x120] sm:$0x1] %v1683_v0 }
  0x3d   : > { %266 = vst [vmem:[#allocation2 + $0x138] sm:$0x1] %v1683_v0 }
  0x3e   : > { %267 = vst [vmem:[#allocation2 + $0x150] sm:$0x1] %v1683_v0 }
  0x3f   : > { %268 = vst [vmem:[#allocation2 + $0x168] sm:$0x1] %v1683_v0 }
  0x40   : > { %269 = vst [vmem:[#allocation2 + $0x180] sm:$0x1] %v1683_v0 }
  0x41   : > { %270 = vst [vmem:[#allocation2 + $0x29] sm:$0x1] %v1683_v0 }
  0x42   : > { %271 = vst [vmem:[#allocation2 + $0x41] sm:$0x1] %v1683_v0 }
  0x43   : > { %272 = vst [vmem:[#allocation2 + $0x59] sm:$0x1] %v1683_v0 }
  0x44   : > { %273 = vst [vmem:[#allocation2 + $0x71] sm:$0x1] %v1683_v0 }
  0x45   : > { %274 = vst [vmem:[#allocation2 + $0x89] sm:$0x1] %v1683_v0 }
  0x46   : > { %275 = vst [vmem:[#allocation2 + $0xa1] sm:$0x1] %v1683_v0 }
  0x47   : > { %276 = vst [vmem:[#allocation2 + $0xb9] sm:$0x1] %v1683_v0 }
  0x48   : > { %277 = vst [vmem:[#allocation2 + $0xd1] sm:$0x1] %v1683_v0 }
  0x49   : > { %278 = vst [vmem:[#allocation2 + $0xe9] sm:$0x1] %v1683_v0 }
  0x4a   : > { %279 = vst [vmem:[#allocation2 + $0x101] sm:$0x1] %v1683_v0 }
  0x4b   : > { %280 = vst [vmem:[#allocation2 + $0x119] sm:$0x1] %v1683_v0 }
  0x4c   : > { %281 = vst [vmem:[#allocation2 + $0x131] sm:$0x1] %v1683_v0 }
  0x4d   : > { %282 = vst [vmem:[#allocation2 + $0x149] sm:$0x1] %v1683_v0 }
  0x4e   : > { %283 = vst [vmem:[#allocation2 + $0x161] sm:$0x1] %v1683_v0 }
  0x4f   : > { %284 = vst [vmem:[#allocation2 + $0x179] sm:$0x1] %v1683_v0 }
  0x50   : > { %285 = vst [vmem:[#allocation2 + $0x191] sm:$0x1] %v1683_v0  ;;  %v1943_v0 = vmul.f32 %v1856_v23, %v1849_v17 }
  0x51   : > { %318 = vst [vmem:[#allocation2 + $0x19] sm:$0xff] %v286_v2  ;;  %v1951_v2 = vld [vmem:[%s1817_s7 + $0x70] sm:$0xff] }
  0x52   : > { %319 = vst [vmem:[#allocation2 + $0x21] sm:$0xff] %v287_v4 }
  0x53   : > { %320 = vst [vmem:[#allocation2 + $0x31] sm:$0xff] %v288_v5 }
  0x54   : > { %321 = vst [vmem:[#allocation2 + $0x39] sm:$0xff] %v289_v10  ;;  %v1956_v10 = vmul.f32 %v1838_v9, %v1844_v13 }
  0x55   : > { %322 = vst [vmem:[#allocation2 + $0x49] sm:$0xff] %v1844_v13  ;;  %v1972_v13 = vld [vmem:[%s1817_s7 + $0x80] sm:$0xff] }
  0x56   : > { %323 = vst [vmem:[#allocation2 + $0x51] sm:$0xff] %v1849_v17 }
  0x57   : > { %324 = vst [vmem:[#allocation2 + $0x61] sm:$0xff] %v1854_v21 }
  0x58   : > { %325 = vst [vmem:[#allocation2 + $0x69] sm:$0xff] %v1863_v26  ;;  %v508_v41 = vld [vmem:[#allocation2 + $0x18] sm:$0xff] }
  0x59   : > { %326 = vst [vmem:[#allocation2 + $0x79] sm:$0xff] %v1871_v30  ;;  %v525_v47 = vmul.f32 %v1865_v27, %v508_v41  ;;  %v606_v48 = vld [vmem:[#allocation2 + $0x1a] sm:$0xff]  ;;  %v374_v50 = vmul.f32 %v508_v41, %v1828_v3  ;;  %v607_v55 = vld [vmem:[#allocation2 + $0x22] sm:$0xff] }
  0x5a   : > { %v509_v49 = vld [vmem:[#allocation2 + $0x20] sm:$0xff]  ;;  %327 = vst [vmem:[#allocation2 + $0x81] sm:$0xff] %v1882_v35  ;;  %v658_v61 = vld [vmem:[#allocation2 + $0x30] sm:$0xff]  ;;  %v623_v4 = vmul.f32 %v1867_v28, %v606_v48  ;;  %v624_v16 = vmul.f32 %v1867_v28, %v607_v55  ;;  %v475_v20 = vmul.f32 %v606_v48, %v1841_v12 }
  0x5b   : > { %2553 = vst [vmem:[#allocation12_spill] sm:$0xff] %v1920_v53  ;;  %v526_v54 = vmul.f32 %v1865_v27, %v509_v49  ;;  %v541_v60 = vadd.f32 %v525_v47, %v489_v36  ;;  %v393_v63 = vadd.f32 %v1836_v7, %v374_v50  ;;  %v756_v5 = vld [vmem:[#allocation2 + $0x32] sm:$0xff]  ;;  %v1967_v18 = vld [vmem:[#allocation2 + $0x3a] sm:$0xff]  ;;  %v675_v22 = vmul.f32 %v1874_v32, %v658_v61 }
  0x5c   : > { %328 = vst [vmem:[#allocation2 + $0x91] sm:$0xff] %v1893_v40  ;;  %v659_v8 = vld [vmem:[#allocation2 + $0x38] sm:$0xff]  ;;  %v527_v29 = vmul.f32 %v658_v61, %v1865_v27  ;;  %v1976_v36 = vld [vmem:[#allocation2 + $0x48] sm:$0xff]  ;;  %v1991_v50 = vld [vmem:[%s1817_s7 + $0x90] sm:$0xff] }
  0x5d   : > { %2554 = vst [vmem:[#allocation13_spill] sm:$0xff] %v1936_v59  ;;  %v542_v6 = vadd.f32 %v526_v54, %v490_v42  ;;  %v590_v15 = vadd.f32 %v574_v31, %v541_v60  ;;  %v442_v19 = vadd.f32 %v426_v38, %v393_v63  ;;  %v375_v31 = vmul.f32 %v509_v49, %v1828_v3  ;;  %v1981_v38 = vld [vmem:[%s1817_s7 + $0x88] sm:$0xff] }
  0x5e   : > { %329 = vst [vmem:[#allocation2 + $0x99] sm:$0xff] %v1907_v46  ;;  %v1984_v42 = vmul.f32 %v1938_v62, %v756_v5  ;;  %v676_v47 = vmul.f32 %v1874_v32, %v659_v8  ;;  %v774_v49 = vmul.f32 %v1938_v62, %v1967_v18  ;;  %v625_v60 = vmul.f32 %v756_v5, %v1867_v28 }
  0x5f   : > { %2555 = vst [vmem:[#allocation14_spill] sm:$0xff] %v1951_v2  ;;  %v591_v25 = vadd.f32 %v575_v34, %v542_v6  ;;  %v639_v41 = vadd.f32 %v623_v4, %v590_v15  ;;  %v491_v48 = vadd.f32 %v475_v20, %v442_v19  ;;  %v1987_v34 = vld [vmem:[#allocation2 + $0x4a] sm:$0xff]  ;;  %v394_v63 = vadd.f32 %v1836_v7, %v375_v31 }
  0x60   : > { %330 = vst [vmem:[#allocation2 + $0xa9] sm:$0xff] %v1920_v53  ;;  %v305_v4 = vld [vmem:[%s1817_s7 + $0x98] sm:$0xff]  ;;  %v677_v19 = vmul.f32 %v1874_v32, %v1976_v36  ;;  %v2001_v20 = vld [vmem:[#allocation2 + $0x50] sm:$0xff]  ;;  %v2008_v31 = vmul.f32 %v1938_v62, %v1987_v34  ;;  %v529_v53 = vmul.f32 %v1976_v36, %v1865_v27 }
  0x61   : > { %2556 = vst [vmem:[#allocation15_spill] sm:$0xff] %v1964_v14  ;;  %v640_v54 = vadd.f32 %v624_v16, %v591_v25  ;;  %v691_v6 = vadd.f32 %v675_v22, %v639_v41  ;;  %v543_v15 = vadd.f32 %v527_v29, %v491_v48  ;;  %v376_v16 = vmul.f32 %v658_v61, %v1828_v3  ;;  %v306_v25 = vld [vmem:[%s1817_s7 + $0xa0] sm:$0xff]  ;;  %v307_v29 = vld [vmem:[%s1817_s7 + $0xa8] sm:$0xff] }
  0x62   : > { %331 = vst [vmem:[#allocation2 + $0xb1] sm:$0xff] %v1936_v59  ;;  %v476_v22 = vmul.f32 %v607_v55, %v1841_v12  ;;  %v528_v61 = vmul.f32 %v659_v8, %v1865_v27  ;;  %v626_v48 = vmul.f32 %v1967_v18, %v1867_v28  ;;  %v678_v55 = vmul.f32 %v1874_v32, %v2001_v20 }
  0x63   : > { %2557 = vst [vmem:[#allocation16_spill] sm:$0xff] %v1972_v13  ;;  %v592_v41 = vadd.f32 %v1889_v39, %v543_v15  ;;  %v377_v39 = vmul.f32 %v659_v8, %v1828_v3  ;;  %v309_v15 = vld [vmem:[%s1817_s7 + $0xb8] sm:$0xff] }
  0x64   : > { %332 = vst [vmem:[#allocation2 + $0xc1] sm:$0xff] %v1951_v2  ;;  %v740_v2 = vadd.f32 %v1877_v33, %v691_v6  ;;  %v2037_v8 = vld [vmem:[#allocation2 + $0x62] sm:$0xff] }
  0x65   : > { %2558 = vst [vmem:[#allocation17_spill] sm:$0xff] %v1981_v38  ;;  %v396_v33 = vadd.f32 %v1836_v7, %v377_v39  ;;  %v777_v39 = vmul.f32 %v1938_v62, %v2037_v8 }
  0x66   : > { %333 = vst [vmem:[#allocation2 + $0xc9] sm:$0xff] %v1964_v14  ;;  %v692_v14 = vadd.f32 %v676_v47, %v640_v54  ;;  %v2018_v47 = vld [vmem:[#allocation2 + $0x52] sm:$0xff]  ;;  %v395_v54 = vadd.f32 %v1836_v7, %v376_v16  ;;  %v641_v16 = vadd.f32 %v625_v60, %v592_v41 }
  0x67   : > { %2559 = vst [vmem:[#allocation18_spill] sm:$0xff] %v1991_v50  ;;  %v445_v41 = vadd.f32 %v1932_v58, %v396_v33  ;;  %v379_v33 = vmul.f32 %v2001_v20, %v1828_v3 }
  0x68   : > { %334 = vst [vmem:[#allocation2 + $0xd9] sm:$0xff] %v1972_v13  ;;  %v443_v13 = vadd.f32 %v1900_v44, %v394_v63  ;;  %v308_v44 = vld [vmem:[%s1817_s7 + $0xb0] sm:$0xff]  ;;  %v741_v59 = vadd.f32 %v1885_v37, %v692_v14  ;;  %v311_v37 = vld [vmem:[%s1817_s7 + $0xc8] sm:$0xff]  ;;  %v693_v14 = vadd.f32 %v677_v19, %v641_v16  ;;  %v313_v19 = vld [vmem:[%s1817_s7 + $0xd8] sm:$0xff] }
  0x69   : > { %335 = vst [vmem:[#allocation2 + $0xe1] sm:$0xff] %v1981_v38  ;;  %v2025_v38 = vld [vmem:[#allocation2 + $0x60] sm:$0xff]  ;;  %v2059_v16 = vld [vmem:[#allocation2 + $0x68] sm:$0xff] }
  0x6a   : > { %336 = vst [vmem:[#allocation2 + $0xf1] sm:$0xff] %v1991_v50  ;;  %v492_v63 = vadd.f32 %v476_v22, %v443_v13  ;;  %v477_v50 = vmul.f32 %v756_v5, %v1841_v12  ;;  %v444_v13 = vadd.f32 %v1916_v52, %v395_v54  ;;  %v776_v5 = vmul.f32 %v1938_v62, %v2018_v47 }
  0x6b   : > { %337 = vst [vmem:[#allocation2 + $0xf9] sm:$0xff] %v305_v4  ;;  %v310_v4 = vld [vmem:[%s1817_s7 + $0xc0] sm:$0xff]  ;;  %v627_v52 = vmul.f32 %v1987_v34, %v1867_v28  ;;  %v679_v6 = vmul.f32 %v1874_v32, %v2025_v38  ;;  %v789_v54 = vadd.f32 %v1984_v42, %v740_v2  ;;  %v315_v2 = vld [vmem:[%s1817_s7 + $0xe8] sm:$0xff]  ;;  %v628_v42 = vmul.f32 %v2018_v47, %v1867_v28 }
  0x6c   : > { %338 = vst [vmem:[#allocation2 + $0x109] sm:$0xff] %v306_v25  ;;  %v544_v22 = vadd.f32 %v528_v61, %v492_v63  ;;  %v493_v60 = vadd.f32 %v477_v50, %v444_v13  ;;  %v312_v25 = vld [vmem:[%s1817_s7 + $0xd0] sm:$0xff]  ;;  %v478_v61 = vmul.f32 %v1967_v18, %v1841_v12  ;;  %v378_v50 = vmul.f32 %v1976_v36, %v1828_v3 }
  0x6d   : > { %339 = vst [vmem:[#allocation2 + $0x111] sm:$0xff] %v307_v29  ;;  %v530_v18 = vmul.f32 %v2001_v20, %v1865_v27  ;;  %v398_v20 = vadd.f32 %v1836_v7, %v379_v33 }
  0x6e   : > { %340 = vst [vmem:[#allocation2 + $0x121] sm:$0xff] %v308_v44  ;;  %v593_v29 = vadd.f32 %v1903_v45, %v544_v22  ;;  %v790_v44 = vadd.f32 %v774_v49, %v741_v59  ;;  %v545_v63 = vadd.f32 %v529_v53, %v493_v60  ;;  %v314_v45 = vld [vmem:[%s1817_s7 + $0xe0] sm:$0xff]  ;;  %v397_v36 = vadd.f32 %v1836_v7, %v378_v50 }
  0x6f   : > { %341 = vst [vmem:[#allocation2 + $0x129] sm:$0xff] %v309_v15  ;;  %v494_v15 = vadd.f32 %v478_v61, %v445_v41  ;;  %v742_v53 = vadd.f32 %v1897_v43, %v693_v14  ;;  %v479_v49 = vmul.f32 %v1987_v34, %v1841_v12  ;;  %v531_v14 = vmul.f32 %v2025_v38, %v1865_v27  ;;  %v761_v50 = vld [vmem:[#allocation2 + $0x6a] sm:$0xff] }
  0x70   : > { %342 = vst [vmem:[#allocation2 + $0x139] sm:$0xff] %v310_v4  ;;  %v642_v58 = vadd.f32 %v626_v48, %v593_v29  ;;  %v594_v59 = vadd.f32 %v1925_v56, %v545_v63  ;;  %v316_v48 = vld [vmem:[%s1817_s7 + $0xf0] sm:$0xff]  ;;  %v446_v22 = vadd.f32 %v1956_v10, %v397_v36  ;;  %v680_v56 = vmul.f32 %v1874_v32, %v2059_v16 }
  0x71   : > { %343 = vst [vmem:[#allocation2 + $0x141] sm:$0xff] %v311_v37  ;;  %v546_v4 = vadd.f32 %v530_v18, %v494_v15  ;;  %v317_v37 = vld [vmem:[%s1817_s7 + $0xf8] sm:$0xff]  ;;  %v431_v34 = vmul.f32 %v1838_v9, %v1849_v17  ;;  %v629_v29 = vmul.f32 %v2037_v8, %v1867_v28  ;;  %v480_v41 = vmul.f32 %v2018_v47, %v1841_v12 }
  0x72   : > { %344 = vst [vmem:[#allocation2 + $0x151] sm:$0xff] %v312_v25  ;;  %v694_v13 = vadd.f32 %v678_v55, %v642_v58  ;;  %v643_v43 = vadd.f32 %v627_v52, %v594_v59  ;;  %v495_v60 = vadd.f32 %v479_v49, %v446_v22  ;;  %v791_v52 = vadd.f32 %v2008_v31, %v742_v53  ;;  %v664_v31 = vld [vmem:[#allocation2 + $0x78] sm:$0xff]  ;;  %v665_v59 = vld [vmem:[#allocation2 + $0x80] sm:$0xff] }
  0x73   : > { %345 = vst [vmem:[#allocation2 + $0x159] sm:$0xff] %v313_v19  ;;  %v595_v10 = vadd.f32 %v1943_v0, %v546_v4  ;;  %v447_v19 = vadd.f32 %v431_v34, %v398_v20  ;;  %v532_v47 = vmul.f32 %v2059_v16, %v1865_v27  ;;  %v762_v58 = vld [vmem:[#allocation2 + $0x7a] sm:$0xff]  ;;  %v778_v18 = vmul.f32 %v1938_v62, %v761_v50  ;;  %v763_v22 = vld [vmem:[#allocation2 + $0x82] sm:$0xff]  ;;  %v666_v20 = vld [vmem:[#allocation2 + $0x90] sm:$0xff] }
  0x74   : > { %346 = vst [vmem:[#allocation2 + $0x169] sm:$0xff] %v314_v45  ;;  %v743_v55 = vadd.f32 %v1913_v51, %v694_v13  ;;  %v695_v25 = vadd.f32 %v679_v6, %v643_v43  ;;  %v547_v51 = vadd.f32 %v531_v14, %v495_v60  ;;  %v380_v6 = vmul.f32 %v2025_v38, %v1828_v3 }
  0x75   : > { %347 = vst [vmem:[#allocation2 + $0x171] sm:$0xff] %v315_v2  ;;  %v644_v61 = vadd.f32 %v628_v42, %v595_v10  ;;  %v730_v36 = vmul.f32 %v1858_v24, %v1871_v30  ;;  %v481_v49 = vmul.f32 %v2037_v8, %v1841_v12  ;;  %v381_v43 = vmul.f32 %v2059_v16, %v1828_v3 }
  0x76   : > { %348 = vst [vmem:[#allocation2 + $0x181] sm:$0xff] %v316_v48  ;;  %v792_v17 = vadd.f32 %v776_v5, %v743_v55  ;;  %v744_v0 = vadd.f32 %v1929_v57, %v695_v25  ;;  %v581_v5 = vmul.f32 %v1856_v23, %v1863_v26  ;;  %v596_v45 = vadd.f32 %v1960_v11, %v547_v51 }
  0x77   : > { %349 = vst [vmem:[#allocation2 + $0x189] sm:$0xff] %v317_v37  ;;  %v696_v63 = vadd.f32 %v680_v56, %v644_v61  ;;  %v432_v57 = vmul.f32 %v1838_v9, %v1854_v21  ;;  %v399_v2 = vadd.f32 %v1836_v7, %v380_v6  ;;  %v681_v11 = vmul.f32 %v1874_v32, %v664_v31 }
  0x78   : > { %807 = vst [vmem:[%s2090_s22] sm:$0xff] %v789_v54  ;;  %v496_v54 = vadd.f32 %v480_v41, %v447_v19  ;;  %v793_v15 = vadd.f32 %v777_v39, %v744_v0  ;;  %v779_v21 = vmul.f32 %v1938_v62, %v762_v58  ;;  %v630_v39 = vmul.f32 %v761_v50, %v1867_v28 }
  0x79   : > { %808 = vst [vmem:[%s2090_s22 + $0x8] sm:$0xff] %v790_v44  ;;  %v745_v38 = vadd.f32 %v1947_v1, %v696_v63  ;;  %v645_v44 = vadd.f32 %v629_v29, %v596_v45  ;;  %v448_v42 = vadd.f32 %v432_v57, %v399_v2  ;;  %v533_v1 = vmul.f32 %v664_v31, %v1865_v27 }
  0x7a   : > { %809 = vst [vmem:[%s2090_s22 + $0x10] sm:$0xff] %v791_v52  ;;  %v548_v53 = vadd.f32 %v532_v47, %v496_v54  ;;  %v582_v37 = vmul.f32 %v1856_v23, %v1871_v30  ;;  %v433_v56 = vmul.f32 %v1838_v9, %v1863_v26  ;;  %v682_v8 = vmul.f32 %v1874_v32, %v665_v59  ;;  %v667_v54 = vld [vmem:[#allocation2 + $0x98] sm:$0xff] }
  0x7b   : > { %810 = vst [vmem:[%s2090_s22 + $0x18] sm:$0xff] %v792_v17  ;;  %v794_v48 = vadd.f32 %v778_v18, %v745_v38  ;;  %v697_v13 = vadd.f32 %v681_v11, %v645_v44  ;;  %v497_v33 = vadd.f32 %v481_v49, %v448_v42  ;;  %v731_v55 = vmul.f32 %v1858_v24, %v1882_v35  ;;  %v764_v17 = vld [vmem:[#allocation2 + $0x92] sm:$0xff]  ;;  %v765_v38 = vld [vmem:[#allocation2 + $0x9a] sm:$0xff] }
  0x7c   : > { %811 = vst [vmem:[%s2090_s22 + $0x20] sm:$0xff] %v793_v15  ;;  %v597_v4 = vadd.f32 %v581_v5, %v548_v53  ;;  %v780_v10 = vmul.f32 %v1938_v62, %v763_v22  ;;  %v400_v52 = vadd.f32 %v1836_v7, %v381_v43  ;;  %v631_v29 = vmul.f32 %v762_v58, %v1867_v28 }
  0x7d   : > { %812 = vst [vmem:[%s2090_s22 + $0x28] sm:$0xff] %v794_v48  ;;  %v746_v14 = vadd.f32 %v730_v36, %v697_v13  ;;  %v549_v60 = vadd.f32 %v533_v1, %v497_v33  ;;  %v482_v26 = vmul.f32 %v761_v50, %v1841_v12  ;;  %v382_v51 = vmul.f32 %v664_v31, %v1828_v3  ;;  %v668_v13 = vld [vmem:[#allocation2 + $0xa8] sm:$0xff] }
  0x7e   : > { %v646_v34 = vadd.f32 %v630_v39, %v597_v4  ;;  %v449_v61 = vadd.f32 %v433_v56, %v400_v52  ;;  %v434_v19 = vmul.f32 %v1838_v9, %v1871_v30  ;;  %v683_v47 = vmul.f32 %v1874_v32, %v666_v20 }
  0x7f   : > { %v795_v25 = vadd.f32 %v779_v21, %v746_v14  ;;  %v598_v41 = vadd.f32 %v582_v37, %v549_v60  ;;  %v732_v5 = vmul.f32 %v1858_v24, %v1893_v40  ;;  %v534_v6 = vmul.f32 %v665_v59, %v1865_v27 }
  0x80   : > { %v698_v16 = vadd.f32 %v682_v8, %v646_v34  ;;  %v498_v50 = vadd.f32 %v482_v26, %v449_v61  ;;  %v583_v45 = vmul.f32 %v1856_v23, %v1882_v35  ;;  %v401_v31 = vadd.f32 %v1836_v7, %v382_v51  ;;  %v2560_v26 = vld [vmem:[#allocation12_spill] sm:$0xff] }
  0x81   : > { %813 = vst [vmem:[%s2090_s22 + $0x30] sm:$0xff] %v795_v25  ;;  %v647_v63 = vadd.f32 %v631_v29, %v598_v41  ;;  %v781_v30 = vmul.f32 %v1938_v62, %v764_v17  ;;  %v632_v15 = vmul.f32 %v763_v22, %v1867_v28  ;;  %v483_v18 = vmul.f32 %v762_v58, %v1841_v12 }
  0x82   : > { %v747_v0 = vadd.f32 %v731_v55, %v698_v16  ;;  %v550_v2 = vadd.f32 %v534_v6, %v498_v50  ;;  %v450_v44 = vadd.f32 %v434_v19, %v401_v31  ;;  %v383_v11 = vmul.f32 %v665_v59, %v1828_v3 }
  0x83   : > { %v699_v36 = vadd.f32 %v683_v47, %v647_v63  ;;  %v684_v53 = vmul.f32 %v1874_v32, %v667_v54  ;;  %v535_v21 = vmul.f32 %v666_v20, %v1865_v27  ;;  %v584_v39 = vmul.f32 %v1856_v23, %v1893_v40 }
  0x84   : > { %v796_v57 = vadd.f32 %v780_v10, %v747_v0  ;;  %v435_v42 = vmul.f32 %v1838_v9, %v1882_v35  ;;  %v599_v48 = vadd.f32 %v583_v45, %v550_v2  ;;  %v499_v58 = vadd.f32 %v483_v18, %v450_v44  ;;  %v766_v35 = vld [vmem:[#allocation2 + $0xaa] sm:$0xff] }
  0x85   : > { %v748_v49 = vadd.f32 %v732_v5, %v699_v36  ;;  %v402_v4 = vadd.f32 %v1836_v7, %v383_v11  ;;  %v733_v59 = vmul.f32 %v1858_v24, %v1907_v46  ;;  %v782_v1 = vmul.f32 %v1938_v62, %v765_v38  ;;  %v669_v10 = vld [vmem:[#allocation2 + $0xb0] sm:$0xff] }
  0x86   : > { %814 = vst [vmem:[%s2090_s22 + $0x38] sm:$0xff] %v796_v57  ;;  %v633_v33 = vmul.f32 %v764_v17, %v1867_v28  ;;  %v484_v37 = vmul.f32 %v763_v22, %v1841_v12  ;;  %v648_v56 = vadd.f32 %v632_v15, %v599_v48  ;;  %v551_v14 = vadd.f32 %v535_v21, %v499_v58  ;;  %v2174_v5 = vld [vmem:[#allocation2 + $0xb2] sm:$0xff]  ;;  %v2561_v15 = vld [vmem:[#allocation13_spill] sm:$0xff] }
  0x87   : > { %v797_v43 = vadd.f32 %v781_v30, %v748_v49  ;;  %v451_v34 = vadd.f32 %v435_v42, %v402_v4  ;;  %v685_v8 = vmul.f32 %v1874_v32, %v668_v13  ;;  %v536_v55 = vmul.f32 %v667_v54, %v1865_v27 }
  0x88   : > { %v384_v60 = vmul.f32 %v666_v20, %v1828_v3  ;;  %v436_v52 = vmul.f32 %v1838_v9, %v1893_v40  ;;  %v700_v25 = vadd.f32 %v684_v53, %v648_v56  ;;  %v600_v16 = vadd.f32 %v584_v39, %v551_v14  ;;  %v670_v39 = vld [vmem:[#allocation2 + $0xc0] sm:$0xff] }
  0x89   : > { %815 = vst [vmem:[%s2090_s22 + $0x40] sm:$0xff] %v797_v43  ;;  %v500_v29 = vadd.f32 %v484_v37, %v451_v34  ;;  %v585_v22 = vmul.f32 %v1856_v23, %v1907_v46  ;;  %v734_v41 = vmul.f32 %v1858_v24, %v2560_v26  ;;  %v783_v61 = vmul.f32 %v1938_v62, %v766_v35  ;;  %v2562_v34 = vld [vmem:[#allocation14_spill] sm:$0xff] }
  0x8a   : > { %v634_v51 = vmul.f32 %v765_v38, %v1867_v28  ;;  %v403_v19 = vadd.f32 %v1836_v7, %v384_v60  ;;  %v749_v20 = vadd.f32 %v733_v59, %v700_v25  ;;  %v649_v0 = vadd.f32 %v633_v33, %v600_v16  ;;  %v768_v60 = vld [vmem:[#allocation2 + $0xc2] sm:$0xff] }
  0x8b   : > { %v552_v40 = vadd.f32 %v536_v55, %v500_v29  ;;  %v686_v47 = vmul.f32 %v1874_v32, %v669_v10  ;;  %v485_v63 = vmul.f32 %v764_v17, %v1841_v12  ;;  %v385_v50 = vmul.f32 %v667_v54, %v1828_v3  ;;  %v671_v25 = vld [vmem:[#allocation2 + $0xc8] sm:$0xff] }
  0x8c   : > { %v452_v6 = vadd.f32 %v436_v52, %v403_v19  ;;  %v437_v45 = vmul.f32 %v1838_v9, %v1907_v46  ;;  %v798_v31 = vadd.f32 %v782_v1, %v749_v20  ;;  %v701_v57 = vadd.f32 %v685_v8, %v649_v0 }
  0x8d   : > { %v601_v30 = vadd.f32 %v585_v22, %v552_v40  ;;  %v735_v18 = vmul.f32 %v1858_v24, %v2561_v15  ;;  %v537_v2 = vmul.f32 %v668_v13, %v1865_v27  ;;  %v586_v44 = vmul.f32 %v1856_v23, %v2560_v26 }
  0x8e   : > { %v501_v36 = vadd.f32 %v485_v63, %v452_v6  ;;  %v404_v11 = vadd.f32 %v1836_v7, %v385_v50  ;;  %816 = vst [vmem:[%s2090_s22 + $0x48] sm:$0xff] %v798_v31  ;;  %v750_v17 = vadd.f32 %v734_v41, %v701_v57  ;;  %v784_v46 = vmul.f32 %v1938_v62, %v2174_v5  ;;  %v2563_v6 = vld [vmem:[#allocation15_spill] sm:$0xff] }
  0x8f   : > { %v650_v54 = vadd.f32 %v634_v51, %v601_v30  ;;  %v635_v53 = vmul.f32 %v766_v35, %v1867_v28  ;;  %v486_v49 = vmul.f32 %v765_v38, %v1841_v12  ;;  %v386_v48 = vmul.f32 %v668_v13, %v1828_v3 }
  0x90   : > { %v553_v21 = vadd.f32 %v537_v2, %v501_v36  ;;  %v453_v42 = vadd.f32 %v437_v45, %v404_v11  ;;  %v799_v58 = vadd.f32 %v783_v61, %v750_v17  ;;  %v538_v59 = vmul.f32 %v669_v10, %v1865_v27 }
  0x91   : > { %v702_v4 = vadd.f32 %v686_v47, %v650_v54  ;;  %v438_v1 = vmul.f32 %v1838_v9, %v2560_v26  ;;  %v587_v43 = vmul.f32 %v1856_v23, %v2561_v15  ;;  %v405_v56 = vadd.f32 %v1836_v7, %v386_v48  ;;  %v2205_v26 = vld [vmem:[#allocation2 + $0xca] sm:$0xff] }
  0x92   : > { %v602_v33 = vadd.f32 %v586_v44, %v553_v21  ;;  %v502_v37 = vadd.f32 %v486_v49, %v453_v42  ;;  %817 = vst [vmem:[%s2090_s22 + $0x50] sm:$0xff] %v799_v58  ;;  %v687_v38 = vmul.f32 %v1874_v32, %v670_v39  ;;  %v736_v13 = vmul.f32 %v1858_v24, %v2562_v34 }
  0x93   : > { %v751_v14 = vadd.f32 %v735_v18, %v702_v4  ;;  %v636_v8 = vmul.f32 %v2174_v5, %v1867_v28  ;;  %v454_v16 = vadd.f32 %v438_v1, %v405_v56  ;;  %v487_v29 = vmul.f32 %v766_v35, %v1841_v12  ;;  %v770_v4 = vld [vmem:[#allocation2 + $0xda] sm:$0xff] }
  0x94   : > { %v651_v55 = vadd.f32 %v635_v53, %v602_v33  ;;  %v554_v52 = vadd.f32 %v538_v59, %v502_v37  ;;  %v539_v41 = vmul.f32 %v670_v39, %v1865_v27  ;;  %v387_v61 = vmul.f32 %v669_v10, %v1828_v3  ;;  %v874_v37 = vld [vmem:[#allocation2 + $0xc9] sm:$0xff] }
  0x95   : > { %v800_v22 = vadd.f32 %v784_v46, %v751_v14  ;;  %v439_v51 = vmul.f32 %v1838_v9, %v2561_v15  ;;  %v503_v0 = vadd.f32 %v487_v29, %v454_v16  ;;  %v588_v40 = vmul.f32 %v1856_v23, %v2562_v34  ;;  %v672_v15 = vld [vmem:[#allocation2 + $0xd8] sm:$0xff] }
  0x96   : > { %v703_v19 = vadd.f32 %v687_v38, %v651_v55  ;;  %v603_v20 = vadd.f32 %v587_v43, %v554_v52  ;;  %v785_v47 = vmul.f32 %v1938_v62, %v768_v60  ;;  %v688_v35 = vmul.f32 %v1874_v32, %v671_v25  ;;  %v673_v38 = vld [vmem:[#allocation2 + $0xe0] sm:$0xff] }
  0x97   : > { %818 = vst [vmem:[%s2090_s22 + $0x58] sm:$0xff] %v800_v22  ;;  %v737_v63 = vmul.f32 %v1858_v24, %v2563_v6  ;;  %v406_v50 = vadd.f32 %v1836_v7, %v387_v61  ;;  %v786_v31 = vmul.f32 %v1938_v62, %v2205_v26  ;;  %v555_v57 = vadd.f32 %v539_v41, %v503_v0  ;;  %v1119_v0 = vld [vmem:[#allocation2 + $0xf0] sm:$0xff] }
  0x98   : > { %v752_v10 = vadd.f32 %v736_v13, %v703_v19  ;;  %v652_v45 = vadd.f32 %v636_v8, %v603_v20  ;;  %v637_v30 = vmul.f32 %v768_v60, %v1867_v28  ;;  %v488_v36 = vmul.f32 %v2174_v5, %v1841_v12  ;;  %v2239_v8 = vld [vmem:[#allocation2 + $0xe2] sm:$0xff] }
  0x99   : > { %v455_v18 = vadd.f32 %v439_v51, %v406_v50  ;;  %v841_v2 = vmul.f32 %v670_v39, %v1828_v3  ;;  %v604_v17 = vadd.f32 %v588_v40, %v555_v57  ;;  %v889_v54 = vmul.f32 %v1838_v9, %v2562_v34  ;;  %v2564_v39 = vld [vmem:[#allocation16_spill] sm:$0xff]  ;;  %v2565_v51 = vld [vmem:[#allocation17_spill] sm:$0xff] }
  0x9a   : > { %v801_v44 = vadd.f32 %v785_v47, %v752_v10  ;;  %v704_v11 = vadd.f32 %v688_v35, %v652_v45  ;;  %v540_v53 = vmul.f32 %v671_v25, %v1865_v27  ;;  %v589_v21 = vmul.f32 %v1856_v23, %v2563_v6  ;;  %v1021_v57 = vld [vmem:[#allocation2 + $0xe1] sm:$0xff] }
  0x9b   : > { %v504_v46 = vadd.f32 %v488_v36, %v455_v18  ;;  %v857_v42 = vadd.f32 %v1836_v7, %v841_v2  ;;  %v653_v48 = vadd.f32 %v637_v30, %v604_v17  ;;  %v689_v5 = vmul.f32 %v1874_v32, %v672_v15  ;;  %v2566_v36 = vld [vmem:[#allocation18_spill] sm:$0xff] }
  0x9c   : > { %819 = vst [vmem:[%s2090_s22 + $0x60] sm:$0xff] %v801_v44  ;;  %v753_v49 = vadd.f32 %v737_v63, %v704_v11  ;;  %v738_v58 = vmul.f32 %v1858_v24, %v2564_v39  ;;  %v937_v33 = vmul.f32 %v768_v60, %v1841_v12  ;;  %v638_v14 = vmul.f32 %v2205_v26, %v1867_v28  ;;  %v875_v63 = vld [vmem:[#allocation2 + $0xd9] sm:$0xff] }
  0x9d   : > { %v556_v59 = vadd.f32 %v540_v53, %v504_v46  ;;  %v905_v1 = vadd.f32 %v889_v54, %v857_v42  ;;  %v705_v56 = vadd.f32 %v689_v5, %v653_v48  ;;  %v842_v34 = vmul.f32 %v671_v25, %v1828_v3  ;;  %v1120_v54 = vld [vmem:[#allocation2 + $0xf8] sm:$0xff] }
  0x9e   : > { %v802_v43 = vadd.f32 %v786_v31, %v753_v49  ;;  %v988_v52 = vmul.f32 %v672_v15, %v1865_v27  ;;  %v1036_v16 = vmul.f32 %v1856_v23, %v2564_v39  ;;  %v787_v29 = vmul.f32 %v1938_v62, %v770_v4  ;;  %v2256_v31 = vld [vmem:[#allocation2 + $0xf2] sm:$0xff] }
  0x9f   : > { %v605_v13 = vadd.f32 %v589_v21, %v556_v59  ;;  %v953_v55 = vadd.f32 %v937_v33, %v905_v1  ;;  %v754_v60 = vadd.f32 %v738_v58, %v705_v56  ;;  %v858_v22 = vadd.f32 %v1836_v7, %v842_v34  ;;  %v1168_v39 = vld [vmem:[#allocation2 + $0xf9] sm:$0xff]  ;;  %v1022_v1 = vld [vmem:[#allocation2 + $0xf1] sm:$0xff] }
  0xa0   : > { %820 = vst [vmem:[%s2090_s22 + $0x68] sm:$0xff] %v802_v43  ;;  %v890_v41 = vmul.f32 %v874_v37, %v1838_v9  ;;  %v690_v25 = vmul.f32 %v1874_v32, %v673_v38  ;;  %v739_v19 = vmul.f32 %v1858_v24, %v2565_v51  ;;  %v788_v47 = vmul.f32 %v1938_v62, %v2239_v8  ;;  %v2270_v58 = vld [vmem:[#allocation2 + $0xfa] sm:$0xff] }
  0xa1   : > { %v654_v61 = vadd.f32 %v638_v14, %v605_v13  ;;  %v1004_v20 = vadd.f32 %v988_v52, %v953_v55  ;;  %v803_v40 = vadd.f32 %v787_v29, %v754_v60  ;;  %v938_v6 = vmul.f32 %v2205_v26, %v1841_v12  ;;  %v1121_v13 = vld [vmem:[#allocation2 + $0x108] sm:$0xff] }
  0xa2   : > { %v906_v35 = vadd.f32 %v890_v41, %v858_v22  ;;  %v1084_v45 = vmul.f32 %v770_v4, %v1867_v28  ;;  %v843_v30 = vmul.f32 %v672_v15, %v1828_v3  ;;  %v1135_v18 = vmul.f32 %v1119_v0, %v1874_v32  ;;  %v1169_v22 = vld [vmem:[#allocation2 + $0x109] sm:$0xff] }
  0xa3   : > { %v706_v50 = vadd.f32 %v690_v25, %v654_v61  ;;  %v1052_v10 = vadd.f32 %v1036_v16, %v1004_v20  ;;  %821 = vst [vmem:[%s2090_s22 + $0x70] sm:$0xff] %v803_v40  ;;  %v1183_v2 = vmul.f32 %v1858_v24, %v2566_v36  ;;  %v989_v11 = vmul.f32 %v673_v38, %v1865_v27  ;;  %v2284_v25 = vld [vmem:[#allocation2 + $0x10a] sm:$0xff] }
  0xa4   : > { %v954_v44 = vadd.f32 %v938_v6, %v906_v35  ;;  %v859_v46 = vadd.f32 %v1836_v7, %v843_v30  ;;  %v891_v53 = vmul.f32 %v875_v63, %v1838_v9  ;;  %v1231_v15 = vmul.f32 %v1938_v62, %v2256_v31  ;;  %v2297_v30 = vld [vmem:[#allocation2 + $0x111] sm:$0xff] }
  0xa5   : > { %v755_v26 = vadd.f32 %v739_v19, %v706_v50  ;;  %v1100_v17 = vadd.f32 %v1084_v45, %v1052_v10  ;;  %v1037_v42 = vmul.f32 %v1021_v57, %v1856_v23  ;;  %v939_v49 = vmul.f32 %v770_v4, %v1841_v12 }
  0xa6   : > { %v1005_v21 = vadd.f32 %v989_v11, %v954_v44  ;;  %v907_v59 = vadd.f32 %v891_v53, %v859_v46  ;;  %v844_v33 = vmul.f32 %v673_v38, %v1828_v3  ;;  %v1085_v43 = vmul.f32 %v2239_v8, %v1867_v28 }
  0xa7   : > { %v804_v48 = vadd.f32 %v788_v47, %v755_v26  ;;  %v1151_v5 = vadd.f32 %v1135_v18, %v1100_v17  ;;  %v1136_v56 = vmul.f32 %v1120_v54, %v1874_v32  ;;  %v990_v14 = vmul.f32 %v1119_v0, %v1865_v27  ;;  %v2304_v17 = vld [vmem:[#allocation2 + $0x112] sm:$0xff] }
  0xa8   : > { %v1053_v37 = vadd.f32 %v1037_v42, %v1005_v21  ;;  %v955_v4 = vadd.f32 %v939_v49, %v907_v59  ;;  %v860_v55 = vadd.f32 %v1836_v7, %v844_v33  ;;  %v892_v52 = vmul.f32 %v1021_v57, %v1838_v9 }
  0xa9   : > { %822 = vst [vmem:[%s2090_s22 + $0x78] sm:$0xff] %v804_v48  ;;  %v1199_v34 = vadd.f32 %v1183_v2, %v1151_v5  ;;  %v1184_v38 = vmul.f32 %v1168_v39, %v1858_v24  ;;  %v1232_v60 = vmul.f32 %v1938_v62, %v2270_v58  ;;  %v1038_v29 = vmul.f32 %v1022_v1, %v1856_v23 }
  0xaa   : > { %v1101_v16 = vadd.f32 %v1085_v43, %v1053_v37  ;;  %v1006_v61 = vadd.f32 %v990_v14, %v955_v4  ;;  %v908_v51 = vadd.f32 %v892_v52, %v860_v55  ;;  %v940_v19 = vmul.f32 %v2239_v8, %v1841_v12  ;;  %v1122_v8 = vld [vmem:[#allocation2 + $0x110] sm:$0xff]  ;;  %v1123_v14 = vld [vmem:[#allocation2 + $0x120] sm:$0xff] }
  0xab   : > { %v1247_v41 = vadd.f32 %v1231_v15, %v1199_v34  ;;  %v1086_v40 = vmul.f32 %v2256_v31, %v1867_v28  ;;  %v1137_v47 = vmul.f32 %v1121_v13, %v1874_v32  ;;  %v845_v35 = vmul.f32 %v1119_v0, %v1828_v3  ;;  %v1171_v34 = vld [vmem:[#allocation2 + $0x121] sm:$0xff] }
  0xac   : > { %v1152_v20 = vadd.f32 %v1136_v56, %v1101_v16  ;;  %v1054_v6 = vadd.f32 %v1038_v29, %v1006_v61  ;;  %v1185_v63 = vmul.f32 %v1169_v22, %v1858_v24  ;;  %v956_v50 = vadd.f32 %v940_v19, %v908_v51  ;;  %v1219_v29 = vld [vmem:[#allocation2 + $0x122] sm:$0xff]  ;;  %v2328_v61 = vld [vmem:[%s2528_s2] ss:$0 sm:$0xff] }
  0xad   : > { %1426 = vst [vmem:[%s2090_s22 + $0x80] sm:$0xff] %v1247_v41  ;;  %v991_v10 = vmul.f32 %v1120_v54, %v1865_v27  ;;  %v1233_v57 = vmul.f32 %v1938_v62, %v2284_v25  ;;  %v861_v18 = vadd.f32 %v1836_v7, %v845_v35  ;;  %v893_v36 = vmul.f32 %v1022_v1, %v1838_v9 }
  0xae   : > { %v1200_v45 = vadd.f32 %v1184_v38, %v1152_v20  ;;  %v1102_v0 = vadd.f32 %v1086_v40, %v1054_v6  ;;  %v1039_v44 = vmul.f32 %v1168_v39, %v1856_v23  ;;  %v1087_v11 = vmul.f32 %v2270_v58, %v1867_v28  ;;  %v1124_v6 = vld [vmem:[#allocation2 + $0x128] sm:$0xff] }
  0xaf   : > { %v1007_v2 = vadd.f32 %v991_v10, %v956_v50  ;;  %v909_v46 = vadd.f32 %v893_v36, %v861_v18  ;;  %v941_v53 = vmul.f32 %v2256_v31, %v1841_v12  ;;  %v846_v15 = vmul.f32 %v1120_v54, %v1828_v3 }
  0xb0   : > { %v1248_v26 = vadd.f32 %v1232_v60, %v1200_v45  ;;  %v1153_v21 = vadd.f32 %v1137_v47, %v1102_v0  ;;  %v1138_v49 = vmul.f32 %v1122_v8, %v1874_v32  ;;  %v1186_v48 = vmul.f32 %v2297_v30, %v1858_v24 }
  0xb1   : > { %v1055_v42 = vadd.f32 %v1039_v44, %v1007_v2  ;;  %v957_v5 = vadd.f32 %v941_v53, %v909_v46  ;;  %v992_v59 = vmul.f32 %v1121_v13, %v1865_v27  ;;  %v862_v1 = vadd.f32 %v1836_v7, %v846_v15  ;;  %v1220_v2 = vld [vmem:[#allocation2 + $0x12a] sm:$0xff] }
  0xb2   : > { %1427 = vst [vmem:[%s2090_s22 + $0x88] sm:$0xff] %v1248_v26  ;;  %v894_v33 = vmul.f32 %v1168_v39, %v1838_v9  ;;  %v1201_v37 = vadd.f32 %v1185_v63, %v1153_v21  ;;  %v1234_v31 = vmul.f32 %v1938_v62, %v2304_v17  ;;  %v1040_v54 = vmul.f32 %v1169_v22, %v1856_v23  ;;  %v1172_v63 = vld [vmem:[#allocation2 + $0x129] sm:$0xff] }
  0xb3   : > { %v1103_v43 = vadd.f32 %v1087_v11, %v1055_v42  ;;  %v1008_v56 = vadd.f32 %v992_v59, %v957_v5  ;;  %v942_v55 = vmul.f32 %v2270_v58, %v1841_v12  ;;  %v847_v52 = vmul.f32 %v1121_v13, %v1828_v3  ;;  %v2352_v5 = vld [vmem:[#allocation2 + $0x139] sm:$0xff] }
  0xb4   : > { %v910_v4 = vadd.f32 %v894_v33, %v862_v1  ;;  %v1249_v7 = vadd.f32 %v1233_v57, %v1201_v37  ;;  %v1088_v39 = vmul.f32 %v2284_v25, %v1867_v28  ;;  %v993_v38 = vmul.f32 %v1122_v8, %v1865_v27 }
  0xb5   : > { %v1154_v16 = vadd.f32 %v1138_v49, %v1103_v43  ;;  %v1056_v60 = vadd.f32 %v1040_v54, %v1008_v56  ;;  %v863_v51 = vadd.f32 %v2328_v61, %v847_v52  ;;  %v895_v58 = vmul.f32 %v1169_v22, %v1838_v9  ;;  %v1221_v54 = vld [vmem:[#allocation2 + $0x13a] sm:$0xff] }
  0xb6   : > { %v958_v41 = vadd.f32 %v942_v55, %v910_v4  ;;  %1428 = vst [vmem:[%s2090_s22 + $0x90] sm:$0xff] %v1249_v7  ;;  %v1139_v19 = vmul.f32 %v1123_v14, %v1874_v32  ;;  %v1187_v20 = vmul.f32 %v1171_v34, %v1858_v24  ;;  %v1041_v40 = vmul.f32 %v2297_v30, %v1856_v23 }
  0xb7   : > { %v1202_v13 = vadd.f32 %v1186_v48, %v1154_v16  ;;  %v1104_v47 = vadd.f32 %v1088_v39, %v1056_v60  ;;  %v911_v50 = vadd.f32 %v895_v58, %v863_v51  ;;  %v943_v10 = vmul.f32 %v2284_v25, %v1841_v12  ;;  %v1125_v48 = vld [vmem:[#allocation2 + $0x138] sm:$0xff] }
  0xb8   : > { %v1009_v35 = vadd.f32 %v993_v38, %v958_v41  ;;  %v1235_v22 = vmul.f32 %v1938_v62, %v1219_v29  ;;  %v1089_v57 = vmul.f32 %v2304_v17, %v1867_v28  ;;  %v848_v18 = vmul.f32 %v1122_v8, %v1828_v3  ;;  %v1126_v38 = vld [vmem:[#allocation2 + $0x140] sm:$0xff] }
  0xb9   : > { %v1250_v45 = vadd.f32 %v1234_v31, %v1202_v13  ;;  %v1155_v36 = vadd.f32 %v1139_v19, %v1104_v47  ;;  %v959_v44 = vadd.f32 %v943_v10, %v911_v50  ;;  %v994_v11 = vmul.f32 %v1123_v14, %v1865_v27  ;;  %v2367_v13 = vld [vmem:[#allocation6 + $0x8] ss:$0 sm:$0xff]  ;;  %v1174_v19 = vld [vmem:[#allocation2 + $0x141] sm:$0xff] }
  0xba   : > { %v1057_v0 = vadd.f32 %v1041_v40, %v1009_v35  ;;  %v1140_v26 = vmul.f32 %v1124_v6, %v1874_v32  ;;  %v1188_v46 = vmul.f32 %v1172_v63, %v1858_v24  ;;  %v864_v25 = vadd.f32 %v2328_v61, %v848_v18  ;;  %v1222_v35 = vld [vmem:[#allocation2 + $0x142] sm:$0xff] }
  0xbb   : > { %1429 = vst [vmem:[%s2090_s22 + $0x98] sm:$0xff] %v1250_v45  ;;  %v896_v53 = vmul.f32 %v2297_v30, %v1838_v9  ;;  %v1203_v15 = vadd.f32 %v1187_v20, %v1155_v36  ;;  %v1010_v42 = vadd.f32 %v994_v11, %v959_v44  ;;  %v1042_v8 = vmul.f32 %v1171_v34, %v1856_v23  ;;  %v1127_v44 = vld [vmem:[#allocation2 + $0x150] sm:$0xff] }
  0xbc   : > { %v1105_v21 = vadd.f32 %v1089_v57, %v1057_v0  ;;  %v1236_v49 = vmul.f32 %v1938_v62, %v1220_v2  ;;  %v944_v1 = vmul.f32 %v2304_v17, %v1841_v12  ;;  %v849_v33 = vmul.f32 %v1123_v14, %v1828_v3  ;;  %v2380_v11 = vld [vmem:[#allocation2 + $0x151] sm:$0xff] }
  0xbd   : > { %v912_v59 = vadd.f32 %v896_v53, %v864_v25  ;;  %v1251_v37 = vadd.f32 %v1235_v22, %v1203_v15  ;;  %v1058_v30 = vadd.f32 %v1042_v8, %v1010_v42  ;;  %v1090_v31 = vmul.f32 %v1219_v29, %v1867_v28  ;;  %v2385_v42 = vld [vmem:[#allocation2 + $0x152] sm:$0xff] }
  0xbe   : > { %v1156_v43 = vadd.f32 %v1140_v26, %v1105_v21  ;;  %v995_v4 = vmul.f32 %v1124_v6, %v1865_v27  ;;  %v865_v62 = vadd.f32 %v2328_v61, %v849_v33  ;;  %v897_v55 = vmul.f32 %v1171_v34, %v1838_v9 }
  0xbf   : > { %v960_v56 = vadd.f32 %v944_v1, %v912_v59  ;;  %1430 = vst [vmem:[%s2090_s22 + $0xa0] sm:$0xff] %v1251_v37  ;;  %v1106_v7 = vadd.f32 %v1090_v31, %v1058_v30  ;;  %v1141_v17 = vmul.f32 %v1125_v48, %v1874_v32  ;;  %v1189_v14 = vmul.f32 %v2352_v5, %v1858_v24 }
  0xc0   : > { %v1204_v52 = vadd.f32 %v1188_v46, %v1156_v43  ;;  %v1043_v39 = vmul.f32 %v1172_v63, %v1856_v23  ;;  %v913_v60 = vadd.f32 %v897_v55, %v865_v62  ;;  %v945_v41 = vmul.f32 %v1219_v29, %v1841_v12 }
  0xc1   : > { %v1011_v16 = vadd.f32 %v995_v4, %v960_v56  ;;  %v1157_v58 = vadd.f32 %v1141_v17, %v1106_v7  ;;  %v1237_v34 = vmul.f32 %v2367_v13, %v1221_v54  ;;  %v850_v20 = vmul.f32 %v1124_v6, %v1828_v3  ;;  %v1176_v7 = vld [vmem:[#allocation2 + $0x159] sm:$0xff] }
  0xc2   : > { %v1252_v51 = vadd.f32 %v1236_v49, %v1204_v52  ;;  %v1091_v47 = vmul.f32 %v1220_v2, %v1867_v28  ;;  %v961_v50 = vadd.f32 %v945_v41, %v913_v60  ;;  %v996_v10 = vmul.f32 %v1125_v48, %v1865_v27  ;;  %v2400_v17 = vld [vmem:[#allocation2 + $0x15a] sm:$0xff] }
  0xc3   : > { %v1059_v40 = vadd.f32 %v1043_v39, %v1011_v16  ;;  %v1205_v45 = vadd.f32 %v1189_v14, %v1157_v58  ;;  %v1142_v29 = vmul.f32 %v1126_v38, %v1874_v32  ;;  %v866_v22 = vadd.f32 %v2328_v61, %v850_v20 }
  0xc4   : > { %1431 = vst [vmem:[%s2090_s22 + $0xa8] sm:$0xff] %v1252_v51  ;;  %v898_v57 = vmul.f32 %v1172_v63, %v1838_v9  ;;  %v1190_v36 = vmul.f32 %v1174_v19, %v1858_v24  ;;  %v1012_v6 = vadd.f32 %v996_v10, %v961_v50  ;;  %v1044_v0 = vmul.f32 %v2352_v5, %v1856_v23  ;;  %v1177_v10 = vld [vmem:[#allocation2 + $0x169] sm:$0xff] }
  0xc5   : > { %v1107_v18 = vadd.f32 %v1091_v47, %v1059_v40  ;;  %v1253_v26 = vadd.f32 %v1237_v34, %v1205_v45  ;;  %v1238_v46 = vmul.f32 %v2367_v13, %v1222_v35  ;;  %v946_v53 = vmul.f32 %v1220_v2, %v1841_v12  ;;  %v1128_v2 = vld [vmem:[#allocation2 + $0x158] sm:$0xff]  ;;  %v1129_v34 = vld [vmem:[#allocation2 + $0x168] sm:$0xff] }
  0xc6   : > { %v914_v25 = vadd.f32 %v898_v57, %v866_v22  ;;  %v1060_v21 = vadd.f32 %v1044_v0, %v1012_v6  ;;  %v1092_v63 = vmul.f32 %v1221_v54, %v1867_v28  ;;  %v851_v8 = vmul.f32 %v1125_v48, %v1828_v3  ;;  %v1225_v22 = vld [vmem:[#allocation2 + $0x16a] sm:$0xff] }
  0xc7   : > { %v1158_v15 = vadd.f32 %v1142_v29, %v1107_v18  ;;  %1432 = vst [vmem:[%s2090_s22 + $0xb0] sm:$0xff] %v1253_v26  ;;  %v1143_v49 = vmul.f32 %v1127_v44, %v1874_v32  ;;  %v1191_v59 = vmul.f32 %v2380_v11, %v1858_v24  ;;  %v997_v33 = vmul.f32 %v1126_v38, %v1865_v27 }
  0xc8   : > { %v962_v1 = vadd.f32 %v946_v53, %v914_v25  ;;  %v1108_v43 = vadd.f32 %v1092_v63, %v1060_v21  ;;  %v867_v30 = vadd.f32 %v2328_v61, %v851_v8  ;;  %v899_v31 = vmul.f32 %v2352_v5, %v1838_v9  ;;  %v1130_v63 = vld [vmem:[#allocation2 + $0x170] sm:$0xff] }
  0xc9   : > { %v1206_v37 = vadd.f32 %v1190_v36, %v1158_v15  ;;  %v1239_v48 = vmul.f32 %v2367_v13, %v2385_v42  ;;  %v1045_v4 = vmul.f32 %v1174_v19, %v1856_v23  ;;  %v947_v62 = vmul.f32 %v1221_v54, %v1841_v12 }
  0xca   : > { %v1013_v56 = vadd.f32 %v997_v33, %v962_v1  ;;  %v1159_v52 = vadd.f32 %v1143_v49, %v1108_v43  ;;  %v915_v14 = vadd.f32 %v899_v31, %v867_v30  ;;  %v852_v16 = vmul.f32 %v1126_v38, %v1828_v3  ;;  %v2431_v43 = vld [vmem:[#allocation2 + $0x172] sm:$0xff] }
  0xcb   : > { %v1254_v55 = vadd.f32 %v1238_v46, %v1206_v37  ;;  %v1093_v60 = vmul.f32 %v1222_v35, %v1867_v28  ;;  %v1144_v5 = vmul.f32 %v1128_v2, %v1874_v32  ;;  %v998_v41 = vmul.f32 %v1127_v44, %v1865_v27 }
  0xcc   : > { %v1061_v39 = vadd.f32 %v1045_v4, %v1013_v56  ;;  %v1207_v51 = vadd.f32 %v1191_v59, %v1159_v52  ;;  %v963_v58 = vadd.f32 %v947_v62, %v915_v14  ;;  %v868_v54 = vadd.f32 %v2328_v61, %v852_v16 }
  0xcd   : > { %1433 = vst [vmem:[%s2090_s22 + $0xb8] sm:$0xff] %v1254_v55  ;;  %v900_v20 = vmul.f32 %v1174_v19, %v1838_v9  ;;  %v1192_v47 = vmul.f32 %v1176_v7, %v1858_v24  ;;  %v1240_v38 = vmul.f32 %v2367_v13, %v2400_v17  ;;  %v1046_v50 = vmul.f32 %v2380_v11, %v1856_v23 }
  0xce   : > { %v1109_v40 = vadd.f32 %v1093_v60, %v1061_v39  ;;  %v1255_v45 = vadd.f32 %v1239_v48, %v1207_v51  ;;  %v1014_v29 = vadd.f32 %v998_v41, %v963_v58  ;;  %v948_v18 = vmul.f32 %v1222_v35, %v1841_v12  ;;  %v2423_v35 = vld [vmem:[#allocation2 + $0x171] sm:$0xff]  ;;  %v1131_v41 = vld [vmem:[#allocation2 + $0x180] sm:$0xff] }
  0xcf   : > { %v916_v57 = vadd.f32 %v900_v20, %v868_v54  ;;  %v1094_v19 = vmul.f32 %v2385_v42, %v1867_v28  ;;  %v1145_v6 = vmul.f32 %v1129_v34, %v1874_v32  ;;  %v853_v0 = vmul.f32 %v1127_v44, %v1828_v3 }
  0xd0   : > { %v1160_v36 = vadd.f32 %v1144_v5, %v1109_v40  ;;  %1434 = vst [vmem:[%s2090_s22 + $0xc0] sm:$0xff] %v1255_v45  ;;  %v1062_v26 = vadd.f32 %v1046_v50, %v1014_v29  ;;  %v1193_v46 = vmul.f32 %v1177_v10, %v1858_v24  ;;  %v999_v53 = vmul.f32 %v1128_v2, %v1865_v27  ;;  %v1179_v50 = vld [vmem:[#allocation2 + $0x181] sm:$0xff] }
  0xd1   : > { %v964_v25 = vadd.f32 %v948_v18, %v916_v57  ;;  %v1241_v21 = vmul.f32 %v2367_v13, %v1225_v22  ;;  %v869_v8 = vadd.f32 %v2328_v61, %v853_v0  ;;  %v901_v49 = vmul.f32 %v2380_v11, %v1838_v9  ;;  %v1227_v45 = vld [vmem:[#allocation2 + $0x182] sm:$0xff] }
  0xd2   : > { %v1208_v15 = vadd.f32 %v1192_v47, %v1160_v36  ;;  %v1110_v44 = vadd.f32 %v1094_v19, %v1062_v26  ;;  %v1047_v1 = vmul.f32 %v1176_v7, %v1856_v23  ;;  %v1095_v33 = vmul.f32 %v2400_v17, %v1867_v28  ;;  %v1132_v26 = vld [vmem:[#allocation2 + $0x188] sm:$0xff] }
  0xd3   : > { %v1015_v59 = vadd.f32 %v999_v53, %v964_v25  ;;  %v917_v30 = vadd.f32 %v901_v49, %v869_v8  ;;  %v949_v31 = vmul.f32 %v2385_v42, %v1841_v12  ;;  %v854_v48 = vmul.f32 %v1128_v2, %v1828_v3 }
  0xd4   : > { %v1256_v37 = vadd.f32 %v1240_v38, %v1208_v15  ;;  %v1161_v56 = vadd.f32 %v1145_v6, %v1110_v44  ;;  %v1146_v11 = vmul.f32 %v1130_v63, %v1874_v32  ;;  %v1194_v62 = vmul.f32 %v2423_v35, %v1858_v24 }
  0xd5   : > { %v1063_v4 = vadd.f32 %v1047_v1, %v1015_v59  ;;  %v965_v55 = vadd.f32 %v949_v31, %v917_v30  ;;  %v1000_v52 = vmul.f32 %v1129_v34, %v1865_v27  ;;  %v870_v14 = vadd.f32 %v2328_v61, %v854_v48 }
  0xd6   : > { %1435 = vst [vmem:[%s2090_s22 + $0xc8] sm:$0xff] %v1256_v37  ;;  %v902_v16 = vmul.f32 %v1176_v7, %v1838_v9  ;;  %v1209_v39 = vadd.f32 %v1193_v46, %v1161_v56  ;;  %v1242_v42 = vmul.f32 %v2367_v13, %v2431_v43  ;;  %v1048_v2 = vmul.f32 %v1177_v10, %v1856_v23  ;;  %v1180_v46 = vld [vmem:[#allocation2 + $0x189] sm:$0xff] }
  0xd7   : > { %v1111_v60 = vadd.f32 %v1095_v33, %v1063_v4  ;;  %v1016_v5 = vadd.f32 %v1000_v52, %v965_v55  ;;  %v950_v58 = vmul.f32 %v2400_v17, %v1841_v12  ;;  %v855_v54 = vmul.f32 %v1129_v34, %v1828_v3  ;;  %v1228_v56 = vld [vmem:[#allocation2 + $0x18a] sm:$0xff] }
  0xd8   : > { %v918_v51 = vadd.f32 %v902_v16, %v870_v14  ;;  %v1257_v20 = vadd.f32 %v1241_v21, %v1209_v39  ;;  %v1096_v7 = vmul.f32 %v1225_v22, %v1867_v28  ;;  %v1001_v47 = vmul.f32 %v1130_v63, %v1865_v27 }
  0xd9   : > { %v1162_v40 = vadd.f32 %v1146_v11, %v1111_v60  ;;  %v1064_v38 = vadd.f32 %v1048_v2, %v1016_v5  ;;  %v871_v57 = vadd.f32 %v2328_v61, %v855_v54  ;;  %v903_v18 = vmul.f32 %v1177_v10, %v1838_v9  ;;  %v1181_v11 = vld [vmem:[#allocation2 + $0x199] sm:$0xff] }
  0xda   : > { %v966_v29 = vadd.f32 %v950_v58, %v918_v51  ;;  %1436 = vst [vmem:[%s2090_s22 + $0xd0] sm:$0xff] %v1257_v20  ;;  %v1147_v17 = vmul.f32 %v1131_v41, %v1874_v32  ;;  %v1049_v34 = vmul.f32 %v2423_v35, %v1856_v23  ;;  %v951_v19 = vmul.f32 %v1225_v22, %v1841_v12  ;;  %v1182_v58 = vld [vmem:[#allocation2 + $0x1a1] sm:$0xff] }
  0xdb   : > { %v1210_v36 = vadd.f32 %v1194_v62, %v1162_v40  ;;  %v1112_v6 = vadd.f32 %v1096_v7, %v1064_v38  ;;  %v919_v25 = vadd.f32 %v903_v18, %v871_v57  ;;  %v1002_v53 = vmul.f32 %v1131_v41, %v1865_v27  ;;  %v1229_v41 = vld [vmem:[#allocation2 + $0x19a] sm:$0xff]  ;;  %v1230_v38 = vld [vmem:[#allocation2 + $0x1a2] sm:$0xff] }
  0xdc   : > { %v1017_v0 = vadd.f32 %v1001_v47, %v966_v29  ;;  %v1195_v10 = vmul.f32 %v1179_v50, %v1858_v24  ;;  %v1243_v21 = vmul.f32 %v2367_v13, %v1227_v45  ;;  %v856_v8 = vmul.f32 %v1130_v63, %v1828_v3 }
  0xdd   : > { %v1258_v15 = vadd.f32 %v1242_v42, %v1210_v36  ;;  %v1163_v49 = vadd.f32 %v1147_v17, %v1112_v6  ;;  %v1097_v59 = vmul.f32 %v2431_v43, %v1867_v28  ;;  %v967_v22 = vadd.f32 %v951_v19, %v919_v25 }
  0xde   : > { %v1065_v44 = vadd.f32 %v1049_v34, %v1017_v0  ;;  %v1148_v1 = vmul.f32 %v1132_v26, %v1874_v32  ;;  %v1196_v33 = vmul.f32 %v1180_v46, %v1858_v24  ;;  %v872_v37 = vadd.f32 %v2328_v61, %v856_v8 }
  0xdf   : > { %1437 = vst [vmem:[%s2090_s22 + $0xd8] sm:$0xff] %v1258_v15  ;;  %v904_v30 = vmul.f32 %v2423_v35, %v1838_v9  ;;  %v1211_v31 = vadd.f32 %v1195_v10, %v1163_v49  ;;  %v1018_v3 = vadd.f32 %v1002_v53, %v967_v22  ;;  %v1050_v63 = vmul.f32 %v1179_v50, %v1856_v23  ;;  %v1531_v35 = vld [vmem:[#allocation2] sm:$0xff] }
  0xe0   : > { %v1113_v48 = vadd.f32 %v1097_v59, %v1065_v44  ;;  %v1098_v4 = vmul.f32 %v1227_v45, %v1867_v28  ;;  %v952_v55 = vmul.f32 %v2431_v43, %v1841_v12  ;;  %v1003_v61 = vmul.f32 %v1132_v26, %v1865_v27 }
  0xe1   : > { %v920_v62 = vadd.f32 %v904_v30, %v872_v37  ;;  %v1259_v52 = vadd.f32 %v1243_v21, %v1211_v31  ;;  %v1066_v9 = vadd.f32 %v1050_v63, %v1018_v3  ;;  %v1149_v16 = vmul.f32 %v1531_v35, %v1874_v32 }
  0xe2   : > { %v1164_v14 = vadd.f32 %v1148_v1, %v1113_v48  ;;  %v1244_v42 = vmul.f32 %v2367_v13, %v1228_v56  ;;  %v1197_v5 = vmul.f32 %v1181_v11, %v1858_v24  ;;  %v1051_v43 = vmul.f32 %v1180_v46, %v1856_v23 }
  0xe3   : > { %v968_v39 = vadd.f32 %v952_v55, %v920_v62  ;;  %1438 = vst [vmem:[%s2090_s22 + $0xe0] sm:$0xff] %v1259_v52  ;;  %v1114_v2 = vadd.f32 %v1098_v4, %v1066_v9  ;;  %v1099_v54 = vmul.f32 %v1228_v56, %v1867_v28  ;;  %v1245_v40 = vmul.f32 %v2367_v13, %v1229_v41 }
  0xe4   : > { %v1212_v60 = vadd.f32 %v1196_v33, %v1164_v14  ;;  %v1198_v7 = vmul.f32 %v1182_v58, %v1858_v24  ;;  %v1246_v45 = vmul.f32 %v2367_v13, %v1230_v38 }
  0xe5   : > { %v1019_v12 = vadd.f32 %v1003_v61, %v968_v39  ;;  %v1165_v51 = vadd.f32 %v1149_v16, %v1114_v2 }
  0xe6   : > { %v1260_v27 = vadd.f32 %v1244_v42, %v1212_v60 }
  0xe7   : > { %v1067_v32 = vadd.f32 %v1051_v43, %v1019_v12  ;;  %v1213_v20 = vadd.f32 %v1197_v5, %v1165_v51 }
  0xe8   : > { %1439 = vst [vmem:[%s2090_s22 + $0xe8] sm:$0xff] %v1260_v27 }
  0xe9   : > { %v1115_v23 = vadd.f32 %v1099_v54, %v1067_v32  ;;  %v1261_v47 = vadd.f32 %v1245_v40, %v1213_v20 }
  0xeb   : > { %v1166_v50 = vadd.f32 %v1149_v16, %v1115_v23  ;;  %1440 = vst [vmem:[%s2090_s22 + $0xf0] sm:$0xff] %v1261_v47 }
  0xed   : > { %v1214_v28 = vadd.f32 %v1198_v7, %v1166_v50 }
  0xef   : > { %v1262_v29 = vadd.f32 %v1246_v45, %v1214_v28 }
  0xf1   : > { %1441 = vst [vmem:[%s2090_s22 + $0xf8] sm:$0xff] %v1262_v29 }
  0xf2   : > { %1619 = shalt.err (!%p1616_p0)
}
  0xf3   : > { %s1684_s6 = smov 128   ;;  %s1685_s20 = smov 8  }
  0xf4   : > { %1455 = dma.vmem_to_hbm [thread:$0]  (%p1788_p5), %s1296_s15, 4096, %s1298_s25, %s1282_s26, %s1684_s6, %s1684_s6, %s1685_s20  }
  0xf5 PF: > { %s1312_s22 = sand.u32 1, %s1658_s12   ;;  %p1466_p3 = pnand %p1418_p11, %p1755_p6 }
  0xf6   : > { %s1313_s27 = scalar_lea.sflag [#allocation5], %s1312_s22 }
  0xf7   : > { %p1467_p7 = pneg %p1466_p3 }
  0xf9   : > { %1653 = dma.done.wait (%p1467_p7), %s1313_s27, 4096  }
  0xfa   : > { %1655 = vsyncadd (%p1467_p7), %s1313_s27, 4294963200  ;;  %s20_s17 = sadd.s32 1, %s1678_s17   ;;  %s2567_s12 = smov %s1662_s13 }
  0xfb   : > { %p17_p9 = scmp.ge.s32.totalorder %s20_s17, 4   ;;  %s2568_s13 = smov %s1666_s14 }
  0xfc   : > { %s2569_s14 = smov %s1797_s18  ;;  %s2570_s15 = smov %s1674_s16 }
  0xfd   : > { %s2571_s16 = smov %s2573_s5  ;;  %19 = sbr.rel (!%p17_p9) target bundleno = 9 (0x9), region = 95 }
 0x102   :  { %1319 = vsyncpa [#allocation4], 1 }
 0x103   :  { %1321 = vsyncpa [#allocation4 + $0x1], 1 }
 0x104   :  { %1322 = vsyncpa [#allocation7], 1 }
 0x105   :  { %1323 = vsyncpa [#allocation5], 1 }
 0x106   :  { %1325 = vsyncpa [#allocation5 + $0x1], 1 }

</bundles_post_ra>
